<compile_context>
chip_gen: v5e
topology: v5e:2x2
jax: 0.10.0
libtpu: 0.0.40
codegen_flags: <defaults>
</compile_context>

<pallas_src>
import jax
import jax.numpy as jnp
from jax import lax
from jax.experimental import pallas as pl
from jax.experimental.pallas import tpu as pltpu
import numpy as np


def _round_up(n, m):
    return ((n + m - 1) // m) * m


def _bilstm_kernel(x_ref, lens_ref, w_in_ref,
                   whh_f_ref, bf_ref,
                   whh_b_ref, bb_ref,
                   wlin_f_ref, wlin_b_ref, blin_ref,
                   out_ref,
                   xpf_ref, xpb_ref, hf_ref, hb_ref):
    """Single-invocation kernel: fused input projection + interleaved BiLSTM recurrence
    + output projection.

    x_ref:       (T, Bp, E)     f32 embedded tokens (time-major, batch padded to sublanes)
    lens_ref:    (Bp, 1)        i32 sequence lengths (0 for padded batch rows)
    w_in_ref:    (E, 8*Hp)      fused fwd+bwd input->gates weights (gate blocks 128-aligned)
    whh_*_ref:   (Hp, 4*Hp)     hidden->gates weights
    b*_ref:      (1, 4*Hp)      combined bias (b_ih + b_hh)
    wlin_*_ref:  (Hp, Op)       output projection halves (fwd / bwd hidden)
    blin_ref:    (1, Op)        output bias
    out_ref:     (T*Bp, Op)     logits (lane-dense flat slab)
    xpf/xpb_ref: (T, Bp, 4*Hp)  precomputed input->gate pre-activations per direction
    hf/hb_ref:   (T, Bp, Hp)    per-timestep hidden states per direction
    """
    T, B, E = x_ref.shape
    Hp = whh_f_ref.shape[0]
    G = 4 * Hp

    # ---- one big MXU matmul for the input->gate pre-activations of both directions ----
    x_all = x_ref[...].reshape(T * B, E)                                   # tile-aligned reshape
    xp = jnp.dot(x_all, w_in_ref[...], preferred_element_type=jnp.float32)  # (T*B, 8*Hp)
    xpf_ref[...] = xp[:, :G].reshape(T, B, G)                              # 512-lane aligned split
    xpb_ref[...] = xp[:, G:].reshape(T, B, G)

    # ---- hoist loop-invariant loads out of the recurrence ----
    whh_f = whh_f_ref[...]
    whh_b = whh_b_ref[...]
    b_f = bf_ref[...]
    b_b = bb_ref[...]
    lens = lens_ref[...]                                                   # (Bp, 1) i32

    zeros = jnp.zeros((B, Hp), jnp.float32)

    def gates_to_hc(gates, c):
        # Hp = 128 -> every slice starts on a 128-lane boundary (free vreg selection).
        i = jax.nn.sigmoid(gates[:, 0:Hp])
        f = jax.nn.sigmoid(gates[:, Hp:2 * Hp])
        g = jnp.tanh(gates[:, 2 * Hp:3 * Hp])
        o = jax.nn.sigmoid(gates[:, 3 * Hp:4 * Hp])
        c_new = f * c + i * g
        h_new = o * jnp.tanh(c_new)
        return h_new, c_new

    # ---- interleaved forward (t = s) and backward (t = T-1-s) recurrence ----
    def body(s, carry):
        hf, cf, hb, cb = carry
        t_f = s
        t_b = T - 1 - s

        # forward direction
        g_f = (xpf_ref[t_f]
               + jnp.dot(hf, whh_f, preferred_element_type=jnp.float32)
               + b_f)                                                      # (Bp, 4*Hp)
        hf_new, cf_new = gates_to_hc(g_f, cf)
        hf_ref[t_f] = jnp.where(t_f < lens, hf_new, 0.0)                   # zero padded steps

        # backward direction: state only advances inside each sequence's valid range
        g_b = (xpb_ref[t_b]
               + jnp.dot(hb, whh_b, preferred_element_type=jnp.float32)
               + b_b)
        hb_new, cb_new = gates_to_hc(g_b, cb)
        valid_b = t_b < lens                                               # (Bp, 1) bool
        hb_ref[t_b] = jnp.where(valid_b, hb_new, 0.0)
        hb_keep = jnp.where(valid_b, hb_new, hb)
        cb_keep = jnp.where(valid_b, cb_new, cb)

        return hf_new, cf_new, hb_keep, cb_keep

    lax.fori_loop(0, T, body, (zeros, zeros, zeros, zeros))

    # ---- output projection: two half-dots, no concat / relayout ----
    hf_all = hf_ref[...].reshape(T * B, Hp)
    hb_all = hb_ref[...].reshape(T * B, Hp)
    logits = (jnp.dot(hf_all, wlin_f_ref[...], preferred_element_type=jnp.float32)
              + jnp.dot(hb_all, wlin_b_ref[...], preferred_element_type=jnp.float32)
              + blin_ref[...])                                             # (T*Bp, Op)
    out_ref[...] = logits


def _pad_gate_cols(w, H, Hp):
    """(rows, 4*H) -> (rows, 4*Hp): each gate block placed at a 128-aligned offset g*Hp."""
    return jnp.concatenate(
        [jnp.pad(w[:, g * H:(g + 1) * H], ((0, 0), (0, Hp - H))) for g in range(4)],
        axis=1)


def bilstm_forward(sents, lengths, params):
    """sents: (B, T) int32 token ids, lengths: (B,) int32. Returns (B, T, O) logits.

    Assumes max(lengths) == T (pad_packed_sequence would otherwise truncate T).
    """
    emb = params["embedding"][sents].astype(jnp.float32)       # (B, T, E) gather (plain-JAX glue)
    B, T, E = emb.shape
    H = params["whh_f_T"].shape[0]
    O = params["wlin_T"].shape[1]
    Hp = _round_up(H, 128)          # gate-block / hidden padding -> lane-aligned slices
    Op = _round_up(O, 128)          # lane-dense output stores
    Bp = _round_up(B, 8)            # f32 sublane padding

    # time-major input, batch padded to sublanes
    x = jnp.transpose(emb, (1, 0, 2))                           # (T, B, E)
    x = jnp.pad(x, ((0, 0), (0, Bp - B), (0, 0)))               # (T, Bp, E)
    lens = jnp.pad(lengths.astype(jnp.int32), (0, Bp - B)).reshape(Bp, 1)

    # fused fwd+bwd input->gates weights (E, 8*Hp), gate blocks 128-aligned
    wih_f_p = _pad_gate_cols(params["wih_f_T"], H, Hp)          # (E, 4*Hp)
    wih_b_p = _pad_gate_cols(params["wih_b_T"], H, Hp)
    w_in = jnp.concatenate([wih_f_p, wih_b_p], axis=1)          # (E, 8*Hp)

    whh_f_p = jnp.pad(_pad_gate_cols(params["whh_f_T"], H, Hp), ((0, Hp - H), (0, 0)))
    whh_b_p = jnp.pad(_pad_gate_cols(params["whh_b_T"], H, Hp), ((0, Hp - H), (0, 0)))
    b_f_p = _pad_gate_cols(params["b_f"], H, Hp)                # (1, 4*Hp)
    b_b_p = _pad_gate_cols(params["b_b"], H, Hp)

    wlin_f_p = jnp.pad(params["wlin_T"][:H], ((0, Hp - H), (0, Op - O)))   # (Hp, Op)
    wlin_b_p = jnp.pad(params["wlin_T"][H:], ((0, Hp - H), (0, Op - O)))
    blin_p = jnp.pad(params["blin"], ((0, 0), (0, Op - O)))                # (1, Op)

    vmem = pl.BlockSpec(memory_space=pltpu.MemorySpace.VMEM)

    out = pl.pallas_call(
        _bilstm_kernel,
        out_shape=jax.ShapeDtypeStruct((T * Bp, Op), jnp.float32),
        in_specs=[vmem] * 10,
        out_specs=vmem,
        scratch_shapes=[
            pltpu.VMEM((T, Bp, 4 * Hp), jnp.float32),   # x_proj forward
            pltpu.VMEM((T, Bp, 4 * Hp), jnp.float32),   # x_proj backward
            pltpu.VMEM((T, Bp, Hp), jnp.float32),       # hf per-step hidden
            pltpu.VMEM((T, Bp, Hp), jnp.float32),       # hb per-step hidden
        ],
        compiler_params=pltpu.CompilerParams(vmem_limit_bytes=64 * 1024 * 1024),
    )(x, lens, w_in,
      whh_f_p, b_f_p, whh_b_p, b_b_p,
      wlin_f_p, wlin_b_p, blin_p)

    logits = out.reshape(T, Bp, Op)
    logits = jnp.transpose(logits, (1, 0, 2))[:B, :, :O]        # (B, T, O)
    return logits


# ------------------------- pure-JAX reference ---------------------------------
def _ref_bilstm(sents, lengths, params):
    emb = params["embedding"][sents]                              # (B, T, E)
    x = jnp.transpose(emb, (1, 0, 2)).astype(jnp.float32)         # (T, B, E)
    T, B, E = x.shape
    H = params["whh_f_T"].shape[0]
    lens = lengths.astype(jnp.int32).reshape(B, 1)

    def cell(xt, h, c, wih, whh, b):
        gates = xt @ wih + h @ whh + b
        i = jax.nn.sigmoid(gates[:, 0:H])
        f = jax.nn.sigmoid(gates[:, H:2 * H])
        g = jnp.tanh(gates[:, 2 * H:3 * H])
        o = jax.nn.sigmoid(gates[:, 3 * H:4 * H])
        c_new = f * c + i * g
        return o * jnp.tanh(c_new), c_new

    h = jnp.zeros((B, H)); c = jnp.zeros((B, H))
    hf = []
    for t in range(T):
        h, c = cell(x[t], h, c, params["wih_f_T"], params["whh_f_T"], params["b_f"])
        hf.append(h * (t < lens).astype(jnp.float32))
    h = jnp.zeros((B, H)); c = jnp.zeros((B, H))
    hb = [None] * T
    for t in range(T - 1, -1, -1):
        h_new, c_new = cell(x[t], h, c, params["wih_b_T"], params["whh_b_T"], params["b_b"])
        valid = (t < lens).astype(jnp.float32)
        h = valid * h_new + (1 - valid) * h
        c = valid * c_new + (1 - valid) * c
        hb[t] = h_new * valid
    h_all = jnp.concatenate([jnp.stack(hf), jnp.stack(hb)], axis=-1)   # (T, B, 2H)
    logits = h_all @ params["wlin_T"] + params["blin"]
    return jnp.transpose(logits, (1, 0, 2))


# ------------------------------- main ------------------------------------------
def _init_params(key, vocab_size, embedding_dim, hidden_size, output_size):
    ks = jax.random.split(key, 12)
    H, E, O = hidden_size, embedding_dim, output_size
    s = 1.0 / np.sqrt(H)
    u = lambda k, shape, bound: jax.random.uniform(k, shape, jnp.float32, -bound, bound)
    return {
        "embedding": jax.random.normal(ks[0], (vocab_size, E), jnp.float32),
        # forward-direction LSTM (gate order i, f, g, o), stored transposed
        "wih_f_T": u(ks[1], (E, 4 * H), s),
        "whh_f_T": u(ks[2], (H, 4 * H), s),
        "b_f":     u(ks[3], (1, 4 * H), s) + u(ks[4], (1, 4 * H), s),  # b_ih + b_hh
        # backward-direction LSTM
        "wih_b_T": u(ks[5], (E, 4 * H), s),
        "whh_b_T": u(ks[6], (H, 4 * H), s),
        "b_b":     u(ks[7], (1, 4 * H), s) + u(ks[8], (1, 4 * H), s),
        # output linear: (2H -> O)
        "wlin_T":  u(ks[9], (2 * H, O), 1.0 / np.sqrt(2 * H)),
        "blin":    u(ks[10], (1, O), 1.0 / np.sqrt(2 * H)),
    }


if __name__ == "__main__":
    VOCAB, E, H, O = 32, 16, 32, 8
    B, T = 2, 8

    key = jax.random.PRNGKey(0)
    kp, ks = jax.random.split(key)
    params = _init_params(kp, VOCAB, E, H, O)

    sents = jax.random.randint(ks, (B, T), 0, VOCAB, dtype=jnp.int32)
    lengths = jnp.array([T, 5], dtype=jnp.int32)   # max(lengths) == T by construction

    logits = bilstm_forward(sents, lengths, params)
    jax.block_until_ready(logits)

    ref = _ref_bilstm(sents, lengths, params)
    np.testing.assert_allclose(np.asarray(logits), np.asarray(ref), rtol=1e-4, atol=1e-4)

    print("KERNEL_OK")
</pallas_src>

<mosaic_0001>
module attributes {stable_mosaic.version = 11 : i64} {
  func.func @_bilstm_kernel(%arg0: memref<8x8x16xf32, #tpu.memory_space<vmem>>, %arg1: memref<8x1xi32, #tpu.memory_space<vmem>>, %arg2: memref<16x1024xf32, #tpu.memory_space<vmem>>, %arg3: memref<128x512xf32, #tpu.memory_space<vmem>>, %arg4: memref<1x512xf32, #tpu.memory_space<vmem>>, %arg5: memref<128x512xf32, #tpu.memory_space<vmem>>, %arg6: memref<1x512xf32, #tpu.memory_space<vmem>>, %arg7: memref<128x128xf32, #tpu.memory_space<vmem>>, %arg8: memref<128x128xf32, #tpu.memory_space<vmem>>, %arg9: memref<1x128xf32, #tpu.memory_space<vmem>>, %arg10: memref<64x128xf32, #tpu.memory_space<vmem>>, %arg11: memref<8x8x512xf32, #tpu.memory_space<vmem>>, %arg12: memref<8x8x512xf32, #tpu.memory_space<vmem>>, %arg13: memref<8x8x128xf32, #tpu.memory_space<vmem>>, %arg14: memref<8x8x128xf32, #tpu.memory_space<vmem>>) attributes {dimension_semantics = [], scalar_prefetch = 0 : i64, scratch_operands = 4 : i64, tpu.core_type = #tpu.core_type<tc>} {
    %c0 = arith.constant 0 : index
    %c0_0 = arith.constant 0 : index
    %c0_1 = arith.constant 0 : index
    %0 = vector.load %arg0[%c0, %c0_0, %c0_1] : memref<8x8x16xf32, #tpu.memory_space<vmem>>, vector<8x8x16xf32>
    %1 = vector.shape_cast %0 : vector<8x8x16xf32> to vector<64x16xf32>
    %c0_2 = arith.constant 0 : index
    %c0_3 = arith.constant 0 : index
    %2 = vector.load %arg2[%c0_2, %c0_3] : memref<16x1024xf32, #tpu.memory_space<vmem>>, vector<16x1024xf32>
    %cst = arith.constant dense<0.000000e+00> : vector<64x1024xf32>
    %3 = tpu.matmul %1, %2, %cst {dimension_numbers = #tpu.dot_dimension_numbers<[1], [0], [0], [1], [0, 0, 1, 1], [], []>} : vector<64x16xf32>, vector<16x1024xf32>, vector<64x1024xf32> -> vector<64x1024xf32>
    %4 = vector.extract_strided_slice %3 {offsets = [0, 0], sizes = [64, 512], strides = [1, 1]} : vector<64x1024xf32> to vector<64x512xf32>
    %5 = vector.shape_cast %4 : vector<64x512xf32> to vector<8x8x512xf32>
    %c0_4 = arith.constant 0 : index
    %c0_5 = arith.constant 0 : index
    %c0_6 = arith.constant 0 : index
    %6 = vector.load %arg11[%c0_4, %c0_5, %c0_6] : memref<8x8x512xf32, #tpu.memory_space<vmem>>, vector<8x8x512xf32>
    tpu.vector_store %arg11[%c0_4, %c0_5, %c0_6], %5 {strides = array<i32>} : memref<8x8x512xf32, #tpu.memory_space<vmem>>, vector<8x8x512xf32>,
    %7 = vector.extract_strided_slice %3 {offsets = [0, 512], sizes = [64, 512], strides = [1, 1]} : vector<64x1024xf32> to vector<64x512xf32>
    %8 = vector.shape_cast %7 : vector<64x512xf32> to vector<8x8x512xf32>
    %c0_7 = arith.constant 0 : index
    %c0_8 = arith.constant 0 : index
    %c0_9 = arith.constant 0 : index
    %9 = vector.load %arg12[%c0_7, %c0_8, %c0_9] : memref<8x8x512xf32, #tpu.memory_space<vmem>>, vector<8x8x512xf32>
    tpu.vector_store %arg12[%c0_7, %c0_8, %c0_9], %8 {strides = array<i32>} : memref<8x8x512xf32, #tpu.memory_space<vmem>>, vector<8x8x512xf32>,
    %c0_10 = arith.constant 0 : index
    %c0_11 = arith.constant 0 : index
    %10 = vector.load %arg3[%c0_10, %c0_11] : memref<128x512xf32, #tpu.memory_space<vmem>>, vector<128x512xf32>
    %c0_12 = arith.constant 0 : index
    %c0_13 = arith.constant 0 : index
    %11 = vector.load %arg5[%c0_12, %c0_13] : memref<128x512xf32, #tpu.memory_space<vmem>>, vector<128x512xf32>
    %c0_14 = arith.constant 0 : index
    %c0_15 = arith.constant 0 : index
    %12 = vector.load %arg4[%c0_14, %c0_15] : memref<1x512xf32, #tpu.memory_space<vmem>>, vector<1x512xf32>
    %c0_16 = arith.constant 0 : index
    %c0_17 = arith.constant 0 : index
    %13 = vector.load %arg6[%c0_16, %c0_17] : memref<1x512xf32, #tpu.memory_space<vmem>>, vector<1x512xf32>
    %c0_18 = arith.constant 0 : index
    %c0_19 = arith.constant 0 : index
    %14 = vector.load %arg1[%c0_18, %c0_19] : memref<8x1xi32, #tpu.memory_space<vmem>>, vector<8x1xi32>
    %cst_20 = arith.constant 0.000000e+00 : f32
    %15 = vector.broadcast %cst_20 : f32 to vector<8x128xf32>
    %c0_i32 = arith.constant 0 : i32
    %c8_i32 = arith.constant 8 : i32
    %16 = arith.addi %c0_i32, %c8_i32 : i32
    %c1_i32 = arith.constant 1 : i32
    %17:4 = scf.for %arg15 = %c0_i32 to %16 step %c1_i32 iter_args(%arg16 = %15, %arg17 = %15, %arg18 = %15, %arg19 = %15) -> (vector<8x128xf32>, vector<8x128xf32>, vector<8x128xf32>, vector<8x128xf32>)  : i32 {
      %c7_i32 = arith.constant 7 : i32
      %31 = arith.subi %c7_i32, %arg15 : i32
      %32 = arith.index_cast %arg15 : i32 to index
      %c0_38 = arith.constant 0 : index
      %c0_39 = arith.constant 0 : index
      %33 = vector.load %arg11[%32, %c0_38, %c0_39] : memref<8x8x512xf32, #tpu.memory_space<vmem>>, vector<1x8x512xf32>
      %34 = vector.shape_cast %33 : vector<1x8x512xf32> to vector<8x512xf32>
      %cst_40 = arith.constant dense<0.000000e+00> : vector<8x512xf32>
      %35 = tpu.matmul %arg16, %10, %cst_40 {dimension_numbers = #tpu.dot_dimension_numbers<[1], [0], [0], [1], [0, 0, 1, 1], [], []>} : vector<8x128xf32>, vector<128x512xf32>, vector<8x512xf32> -> vector<8x512xf32>
      %36 = arith.addf %34, %35 : vector<8x512xf32>
      %37 = vector.broadcast %12 : vector<1x512xf32> to vector<8x512xf32>
      %38 = arith.addf %36, %37 : vector<8x512xf32>
      %39 = vector.extract_strided_slice %38 {offsets = [0, 0], sizes = [8, 128], strides = [1, 1]} : vector<8x512xf32> to vector<8x128xf32>
      %40 = arith.negf %39 : vector<8x128xf32>
      %41 = math.exp %40 : vector<8x128xf32>
      %cst_41 = arith.constant 1.000000e+00 : f32
      %42 = vector.broadcast %cst_41 : f32 to vector<8x128xf32>
      %43 = arith.addf %42, %41 : vector<8x128xf32>
      %44 = arith.divf %42, %43 : vector<8x128xf32>
      %45 = vector.extract_strided_slice %38 {offsets = [0, 128], sizes = [8, 128], strides = [1, 1]} : vector<8x512xf32> to vector<8x128xf32>
      %46 = arith.negf %45 : vector<8x128xf32>
      %47 = math.exp %46 : vector<8x128xf32>
      %cst_42 = arith.constant 1.000000e+00 : f32
      %48 = vector.broadcast %cst_42 : f32 to vector<8x128xf32>
      %49 = arith.addf %48, %47 : vector<8x128xf32>
      %50 = arith.divf %48, %49 : vector<8x128xf32>
      %51 = vector.extract_strided_slice %38 {offsets = [0, 256], sizes = [8, 128], strides = [1, 1]} : vector<8x512xf32> to vector<8x128xf32>
      %52 = math.tanh %51 : vector<8x128xf32>
      %53 = vector.extract_strided_slice %38 {offsets = [0, 384], sizes = [8, 128], strides = [1, 1]} : vector<8x512xf32> to vector<8x128xf32>
      %54 = arith.negf %53 : vector<8x128xf32>
      %55 = math.exp %54 : vector<8x128xf32>
      %cst_43 = arith.constant 1.000000e+00 : f32
      %56 = vector.broadcast %cst_43 : f32 to vector<8x128xf32>
      %57 = arith.addf %56, %55 : vector<8x128xf32>
      %58 = arith.divf %56, %57 : vector<8x128xf32>
      %59 = arith.mulf %50, %arg17 : vector<8x128xf32>
      %60 = arith.mulf %44, %52 : vector<8x128xf32>
      %61 = arith.addf %59, %60 : vector<8x128xf32>
      %62 = math.tanh %61 : vector<8x128xf32>
      %63 = arith.mulf %58, %62 : vector<8x128xf32>
      %64 = vector.broadcast %arg15 : i32 to vector<8x1xi32>
      %65 = arith.cmpi slt, %64, %14 : vector<8x1xi32>
      %cst_44 = arith.constant 0.000000e+00 : f32
      %66 = vector.shape_cast %65 : vector<8x1xi1> to vector<8x1xi1>
      %67 = vector.broadcast %66 : vector<8x1xi1> to vector<8x128xi1>
      %68 = vector.broadcast %cst_44 : f32 to vector<8x128xf32>
      %69 = arith.select %67, %63, %68 : vector<8x128xi1>, vector<8x128xf32>
      %70 = arith.index_cast %arg15 : i32 to index
      %c0_45 = arith.constant 0 : index
      %c0_46 = arith.constant 0 : index
      %71 = vector.load %arg13[%70, %c0_45, %c0_46] : memref<8x8x128xf32, #tpu.memory_space<vmem>>, vector<1x8x128xf32>
      %72 = vector.shape_cast %71 : vector<1x8x128xf32> to vector<8x128xf32>
      %73 = vector.shape_cast %69 : vector<8x128xf32> to vector<1x8x128xf32>
      tpu.vector_store %arg13[%70, %c0_45, %c0_46], %73 {strides = array<i32>} : memref<8x8x128xf32, #tpu.memory_space<vmem>>, vector<1x8x128xf32>,
      %74 = arith.index_cast %31 : i32 to index
      %c0_47 = arith.constant 0 : index
      %c0_48 = arith.constant 0 : index
      %75 = vector.load %arg12[%74, %c0_47, %c0_48] : memref<8x8x512xf32, #tpu.memory_space<vmem>>, vector<1x8x512xf32>
      %76 = vector.shape_cast %75 : vector<1x8x512xf32> to vector<8x512xf32>
      %cst_49 = arith.constant dense<0.000000e+00> : vector<8x512xf32>
      %77 = tpu.matmul %arg18, %11, %cst_49 {dimension_numbers = #tpu.dot_dimension_numbers<[1], [0], [0], [1], [0, 0, 1, 1], [], []>} : vector<8x128xf32>, vector<128x512xf32>, vector<8x512xf32> -> vector<8x512xf32>
      %78 = arith.addf %76, %77 : vector<8x512xf32>
      %79 = vector.broadcast %13 : vector<1x512xf32> to vector<8x512xf32>
      %80 = arith.addf %78, %79 : vector<8x512xf32>
      %81 = vector.extract_strided_slice %80 {offsets = [0, 0], sizes = [8, 128], strides = [1, 1]} : vector<8x512xf32> to vector<8x128xf32>
      %82 = arith.negf %81 : vector<8x128xf32>
      %83 = math.exp %82 : vector<8x128xf32>
      %cst_50 = arith.constant 1.000000e+00 : f32
      %84 = vector.broadcast %cst_50 : f32 to vector<8x128xf32>
      %85 = arith.addf %84, %83 : vector<8x128xf32>
      %86 = arith.divf %84, %85 : vector<8x128xf32>
      %87 = vector.extract_strided_slice %80 {offsets = [0, 128], sizes = [8, 128], strides = [1, 1]} : vector<8x512xf32> to vector<8x128xf32>
      %88 = arith.negf %87 : vector<8x128xf32>
      %89 = math.exp %88 : vector<8x128xf32>
      %cst_51 = arith.constant 1.000000e+00 : f32
      %90 = vector.broadcast %cst_51 : f32 to vector<8x128xf32>
      %91 = arith.addf %90, %89 : vector<8x128xf32>
      %92 = arith.divf %90, %91 : vector<8x128xf32>
      %93 = vector.extract_strided_slice %80 {offsets = [0, 256], sizes = [8, 128], strides = [1, 1]} : vector<8x512xf32> to vector<8x128xf32>
      %94 = math.tanh %93 : vector<8x128xf32>
      %95 = vector.extract_strided_slice %80 {offsets = [0, 384], sizes = [8, 128], strides = [1, 1]} : vector<8x512xf32> to vector<8x128xf32>
      %96 = arith.negf %95 : vector<8x128xf32>
      %97 = math.exp %96 : vector<8x128xf32>
      %cst_52 = arith.constant 1.000000e+00 : f32
      %98 = vector.broadcast %cst_52 : f32 to vector<8x128xf32>
      %99 = arith.addf %98, %97 : vector<8x128xf32>
      %100 = arith.divf %98, %99 : vector<8x128xf32>
      %101 = arith.mulf %92, %arg19 : vector<8x128xf32>
      %102 = arith.mulf %86, %94 : vector<8x128xf32>
      %103 = arith.addf %101, %102 : vector<8x128xf32>
      %104 = math.tanh %103 : vector<8x128xf32>
      %105 = arith.mulf %100, %104 : vector<8x128xf32>
      %106 = vector.broadcast %31 : i32 to vector<8x1xi32>
      %107 = arith.cmpi slt, %106, %14 : vector<8x1xi32>
      %cst_53 = arith.constant 0.000000e+00 : f32
      %108 = vector.shape_cast %107 : vector<8x1xi1> to vector<8x1xi1>
      %109 = vector.broadcast %108 : vector<8x1xi1> to vector<8x128xi1>
      %110 = vector.broadcast %cst_53 : f32 to vector<8x128xf32>
      %111 = arith.select %109, %105, %110 : vector<8x128xi1>, vector<8x128xf32>
      %112 = arith.index_cast %31 : i32 to index
      %c0_54 = arith.constant 0 : index
      %c0_55 = arith.constant 0 : index
      %113 = vector.load %arg14[%112, %c0_54, %c0_55] : memref<8x8x128xf32, #tpu.memory_space<vmem>>, vector<1x8x128xf32>
      %114 = vector.shape_cast %113 : vector<1x8x128xf32> to vector<8x128xf32>
      %115 = vector.shape_cast %111 : vector<8x128xf32> to vector<1x8x128xf32>
      tpu.vector_store %arg14[%112, %c0_54, %c0_55], %115 {strides = array<i32>} : memref<8x8x128xf32, #tpu.memory_space<vmem>>, vector<1x8x128xf32>,
      %116 = vector.shape_cast %107 : vector<8x1xi1> to vector<8x1xi1>
      %117 = vector.broadcast %116 : vector<8x1xi1> to vector<8x128xi1>
      %118 = arith.select %117, %105, %arg18 : vector<8x128xi1>, vector<8x128xf32>
      %119 = vector.shape_cast %107 : vector<8x1xi1> to vector<8x1xi1>
      %120 = vector.broadcast %119 : vector<8x1xi1> to vector<8x128xi1>
      %121 = arith.select %120, %103, %arg19 : vector<8x128xi1>, vector<8x128xf32>
      scf.yield %63, %61, %118, %121 : vector<8x128xf32>, vector<8x128xf32>, vector<8x128xf32>, vector<8x128xf32>
    }
    %c8_i32_21 = arith.constant 8 : i32
    %c0_22 = arith.constant 0 : index
    %c0_23 = arith.constant 0 : index
    %c0_24 = arith.constant 0 : index
    %18 = vector.load %arg13[%c0_22, %c0_23, %c0_24] : memref<8x8x128xf32, #tpu.memory_space<vmem>>, vector<8x8x128xf32>
    %19 = vector.shape_cast %18 : vector<8x8x128xf32> to vector<64x128xf32>
    %c0_25 = arith.constant 0 : index
    %c0_26 = arith.constant 0 : index
    %c0_27 = arith.constant 0 : index
    %20 = vector.load %arg14[%c0_25, %c0_26, %c0_27] : memref<8x8x128xf32, #tpu.memory_space<vmem>>, vector<8x8x128xf32>
    %21 = vector.shape_cast %20 : vector<8x8x128xf32> to vector<64x128xf32>
    %c0_28 = arith.constant 0 : index
    %c0_29 = arith.constant 0 : index
    %22 = vector.load %arg7[%c0_28, %c0_29] : memref<128x128xf32, #tpu.memory_space<vmem>>, vector<128x128xf32>
    %cst_30 = arith.constant dense<0.000000e+00> : vector<64x128xf32>
    %23 = tpu.matmul %19, %22, %cst_30 {dimension_numbers = #tpu.dot_dimension_numbers<[1], [0], [0], [1], [0, 0, 1, 1], [], []>} : vector<64x128xf32>, vector<128x128xf32>, vector<64x128xf32> -> vector<64x128xf32>
    %c0_31 = arith.constant 0 : index
    %c0_32 = arith.constant 0 : index
    %24 = vector.load %arg8[%c0_31, %c0_32] : memref<128x128xf32, #tpu.memory_space<vmem>>, vector<128x128xf32>
    %cst_33 = arith.constant dense<0.000000e+00> : vector<64x128xf32>
    %25 = tpu.matmul %21, %24, %cst_33 {dimension_numbers = #tpu.dot_dimension_numbers<[1], [0], [0], [1], [0, 0, 1, 1], [], []>} : vector<64x128xf32>, vector<128x128xf32>, vector<64x128xf32> -> vector<64x128xf32>
    %26 = arith.addf %23, %25 : vector<64x128xf32>
    %c0_34 = arith.constant 0 : index
    %c0_35 = arith.constant 0 : index
    %27 = vector.load %arg9[%c0_34, %c0_35] : memref<1x128xf32, #tpu.memory_space<vmem>>, vector<1x128xf32>
    %28 = vector.broadcast %27 : vector<1x128xf32> to vector<64x128xf32>
    %29 = arith.addf %26, %28 : vector<64x128xf32>
    %c0_36 = arith.constant 0 : index
    %c0_37 = arith.constant 0 : index
    %30 = vector.load %arg10[%c0_36, %c0_37] : memref<64x128xf32, #tpu.memory_space<vmem>>, vector<64x128xf32>
    tpu.vector_store %arg10[%c0_36, %c0_37], %29 {strides = array<i32>} : memref<64x128xf32, #tpu.memory_space<vmem>>, vector<64x128xf32>,
    return
  }
}

</mosaic_0001>

<bundles_post_ra>
// kernel: tpu_custom_call.1
= control target key start
LH: loop header
LB: loop body
LE: loop exit
PB: predicated region body
PF: predicated region fallthrough
CT: control target
= control target key end

     0   :  { %15 = vsyncpa [#allocation7], 0  ;;  %s2372_s0 = inlined_call_operand.hbm [shape: f32[8,8,16], index: 0, kind: input, shape index: {}]   ;;  %s2373_s1 = inlined_call_operand.vmem [shape: s32[8,1], index: 1, kind: input, shape index: {}]   ;;  %s2374_s2 = inlined_call_operand.hbm [shape: f32[16,1024], index: 2, kind: input, shape index: {}]   ;;  %s2375_s3 = inlined_call_operand.hbm [shape: f32[128,512], index: 3, kind: input, shape index: {}]   ;;  %s2376_s4 = inlined_call_operand.vmem [shape: f32[1,512], index: 4, kind: input, shape index: {}]   ;;  %s2377_s5 = inlined_call_operand.hbm [shape: f32[128,512], index: 5, kind: input, shape index: {}]   ;;  %s2378_s6 = inlined_call_operand.vmem [shape: f32[1,512], index: 6, kind: input, shape index: {}]   ;;  %s2379_s7 = inlined_call_operand.hbm [shape: f32[128,128], index: 7, kind: input, shape index: {}]   ;;  %s2380_s8 = inlined_call_operand.hbm [shape: f32[128,128], index: 8, kind: input, shape index: {}]   ;;  %s2381_s9 = inlined_call_operand.vmem [shape: f32[1,128], index: 9, kind: input, shape index: {}]   ;;  %s2382_s10 = inlined_call_operand.hbm [shape: f32[64,128], index: 10, kind: output, shape index: {}]  }
   0x1   :  { %16 = vsyncpa [#allocation10], 0 }
   0x2   :  { %17 = vsyncpa [#allocation13], 0 }
   0x3   :  { %18 = vsyncpa [#allocation16], 0  ;;  %s39_s15 = sshll.u32 %s2374_s2, 4  ;;  %s40_s15 = int_to_ptr.hbm [resolvable:$true] %s39_s15 }
   0x4   :  { %19 = vsyncpa [#allocation8], 0  ;;  %s1684_s16 = smov [#allocation9]   ;;  %s1685_s18 = smov 1024  }
   0x5   :  { %s41_s17 = sshll.u32 %s1684_s16, 4  ;;  %s1686_s19 = smov 64   ;;  %s42_s17 = int_to_ptr.vmem [resolvable:$true] %s41_s17 }
   0x6   :  { %47 = dma.hbm_to_vmem [thread:$0]  %s40_s15, 2048, %s42_s17, [#allocation10], %s1685_s18, %s1685_s18, %s1686_s19  }
   0x7   :  { %s67_s22 = sshll.u32 %s2377_s5, 4  ;;  %s1687_s23 = smov [#allocation12]   ;;  %s68_s22 = int_to_ptr.hbm [resolvable:$true] %s67_s22 }
   0x8   :  { %s69_s24 = sshll.u32 %s1687_s23, 4  ;;  %s24_s27 = sshll.u32 %s2372_s0, 4  ;;  %s70_s24 = int_to_ptr.vmem [resolvable:$true] %s69_s24  ;;  %s25_s27 = int_to_ptr.hbm [resolvable:$true] %s24_s27 }
   0x9   :  { %s1688_s2 = smov 512   ;;  %s1689_s28 = smov 32  }
   0xa   :  { %75 = dma.hbm_to_vmem [thread:$0]  %s68_s22, 8192, %s70_s24, [#allocation13], %s1688_s2, %s1688_s2, %s1689_s28  }
   0xb   :  { %s1690_s29 = smov [#allocation6]   ;;  %s52_s13 = sshll.u32 %s2375_s3, 4  ;;  %s53_s13 = int_to_ptr.hbm [resolvable:$true] %s52_s13 }
   0xc   :  { %s26_s30 = sshll.u32 %s1690_s29, 4  ;;  %s1691_s5 = smov 128   ;;  %s27_s30 = int_to_ptr.vmem [resolvable:$true] %s26_s30 }
   0xd   :  { %s1692_s14 = smov 8   ;;  %s1693_s0 = smov [#allocation11]  }
   0xe   :  { %32 = dma.hbm_to_vmem [thread:$0]  %s25_s27, 1024, %s27_s30, [#allocation7], %s1691_s5, %s1691_s5, %s1692_s14  }
   0xf   :  { %s54_s15 = sshll.u32 %s1693_s0, 4  ;;  %s82_s18 = sshll.u32 %s2379_s7, 4  ;;  %s55_s15 = int_to_ptr.vmem [resolvable:$true] %s54_s15  ;;  %s83_s18 = int_to_ptr.hbm [resolvable:$true] %s82_s18 }
  0x10   :  { %60 = dma.hbm_to_vmem [thread:$0]  %s53_s13, 8192, %s55_s15, [#allocation10], %s1688_s2, %s1688_s2, %s1689_s28  }
  0x11   :  { %s95_s3 = sshll.u32 %s2380_s8, 4  ;;  %s1694_s21 = smov [#allocation14]   ;;  %s96_s3 = int_to_ptr.hbm [resolvable:$true] %s95_s3 }
  0x12   :  { %s84_s22 = sshll.u32 %s1694_s21, 4  ;;  %s1695_s23 = smov [#allocation15]   ;;  %s85_s22 = int_to_ptr.vmem [resolvable:$true] %s84_s22 }
  0x13   :  { %90 = dma.hbm_to_vmem [thread:$0]  %s83_s18, 2048, %s85_s22, [#allocation13], %s1691_s5, %s1691_s5, %s1692_s14  }
  0x14   :  { %s97_s24 = sshll.u32 %s1695_s23, 4  ;;  %s98_s24 = int_to_ptr.vmem [resolvable:$true] %s97_s24 }
  0x15   :  { %103 = dma.hbm_to_vmem [thread:$0]  %s96_s3, 2048, %s98_s24, [#allocation16], %s1691_s5, %s1691_s5, %s1692_s14  }
  0x16   :  { %1654 = dma.done.wait [#allocation7], 1024  }
  0x17   :  { %1655 = vsyncadd [#allocation7], 4294966272 }
  0x18   :  { %1656 = dma.done.wait [#allocation10], 10240  }
  0x19   :  { %1657 = vsyncadd [#allocation10], 4294957056 }
  0x1a   :  { %1658 = dma.done.wait [#allocation13], 10240  }
  0x1b   :  { %1659 = vsyncadd [#allocation13], 4294957056 }
  0x1c   :  { %1660 = dma.done.wait [#allocation16], 2048  }
  0x1d   :  { %1661 = vsyncadd [#allocation16], 4294965248  ;;  %v1780_v0 = vld [vmem:[#allocation11] sm:$0xff]  ;;  %v1782_v1 = vld [vmem:[#allocation11 + $0x8] sm:$0xff]  ;;  %vm154_vm0 = vcmask 130048  }
  0x1e   :  { %2388 = vst [vmem:[#allocation23_spill] sm:$0xff] %v1780_v0  ;;  %v1784_v2 = vld [vmem:[#allocation11 + $0x10] sm:$0xff]  ;;  %v1786_v3 = vld [vmem:[#allocation11 + $0x18] sm:$0xff]  ;;  %v1788_v4 = vld [vmem:[#allocation11 + $0x20] sm:$0xff] }
  0x1f   :  { %2389 = vst [vmem:[#allocation24_spill] sm:$0xff] %v1782_v1  ;;  %v1790_v5 = vld [vmem:[#allocation11 + $0x28] sm:$0xff]  ;;  %v1792_v6 = vld [vmem:[#allocation11 + $0x30] sm:$0xff]  ;;  %v1794_v7 = vld [vmem:[#allocation11 + $0x38] sm:$0xff] }
  0x20   :  { %2390 = vst [vmem:[#allocation25_spill] sm:$0xff] %v1784_v2  ;;  %v1796_v8 = vld [vmem:[#allocation11 + $0x40] sm:$0xff]  ;;  %v1798_v9 = vld [vmem:[#allocation11 + $0x48] sm:$0xff]  ;;  %v1800_v10 = vld [vmem:[#allocation11 + $0x50] sm:$0xff] }
  0x21   :  { %2391 = vst [vmem:[#allocation26_spill] sm:$0xff] %v1786_v3  ;;  %v1802_v11 = vld [vmem:[#allocation11 + $0x58] sm:$0xff]  ;;  %v1804_v12 = vld [vmem:[#allocation11 + $0x60] sm:$0xff]  ;;  %v1806_v13 = vld [vmem:[#allocation11 + $0x68] sm:$0xff] }
  0x22   :  { %2392 = vst [vmem:[#allocation27_spill] sm:$0xff] %v1788_v4  ;;  %v1808_v14 = vld [vmem:[#allocation11 + $0x70] sm:$0xff]  ;;  %v1810_v15 = vld [vmem:[#allocation11 + $0x78] sm:$0xff]  ;;  %v1812_v16 = vld [vmem:[#allocation11 + $0x80] sm:$0xff] }
  0x23   :  { %2393 = vst [vmem:[#allocation28_spill] sm:$0xff] %v1790_v5  ;;  %v1814_v17 = vld [vmem:[#allocation11 + $0x88] sm:$0xff]  ;;  %v1816_v18 = vld [vmem:[#allocation11 + $0x90] sm:$0xff]  ;;  %v1818_v19 = vld [vmem:[#allocation11 + $0x98] sm:$0xff] }
  0x24   :  { %2394 = vst [vmem:[#allocation29_spill] sm:$0xff] %v1792_v6  ;;  %v1820_v20 = vld [vmem:[#allocation11 + $0xa0] sm:$0xff]  ;;  %v1822_v21 = vld [vmem:[#allocation11 + $0xa8] sm:$0xff]  ;;  %v1824_v22 = vld [vmem:[#allocation11 + $0xb0] sm:$0xff] }
  0x25   :  { %2395 = vst [vmem:[#allocation30_spill] sm:$0xff] %v1794_v7  ;;  %v1826_v23 = vld [vmem:[#allocation11 + $0xb8] sm:$0xff]  ;;  %v1828_v24 = vld [vmem:[#allocation11 + $0xc0] sm:$0xff]  ;;  %v1830_v25 = vld [vmem:[#allocation11 + $0xc8] sm:$0xff] }
  0x26   :  { %2396 = vst [vmem:[#allocation31_spill] sm:$0xff] %v1796_v8  ;;  %v1832_v26 = vld [vmem:[#allocation11 + $0xd0] sm:$0xff]  ;;  %v1834_v27 = vld [vmem:[#allocation11 + $0xd8] sm:$0xff]  ;;  %v1836_v28 = vld [vmem:[#allocation11 + $0xe0] sm:$0xff] }
  0x27   :  { %2397 = vst [vmem:[#allocation32_spill] sm:$0xff] %v1798_v9  ;;  %v1838_v29 = vld [vmem:[#allocation11 + $0xe8] sm:$0xff]  ;;  %v1840_v30 = vld [vmem:[#allocation11 + $0xf0] sm:$0xff]  ;;  %v1842_v31 = vld [vmem:[#allocation11 + $0xf8] sm:$0xff] }
  0x28   :  { %2398 = vst [vmem:[#allocation33_spill] sm:$0xff] %v1800_v10  ;;  %v1844_v32 = vld [vmem:[#allocation11 + $0x100] sm:$0xff]  ;;  %v1846_v33 = vld [vmem:[#allocation11 + $0x108] sm:$0xff]  ;;  %v1848_v34 = vld [vmem:[#allocation11 + $0x110] sm:$0xff] }
  0x29   :  { %2399 = vst [vmem:[#allocation34_spill] sm:$0xff] %v1802_v11  ;;  %v1850_v35 = vld [vmem:[#allocation11 + $0x118] sm:$0xff]  ;;  %v1852_v36 = vld [vmem:[#allocation11 + $0x120] sm:$0xff]  ;;  %v1854_v37 = vld [vmem:[#allocation11 + $0x128] sm:$0xff] }
  0x2a   :  { %2400 = vst [vmem:[#allocation35_spill] sm:$0xff] %v1804_v12  ;;  %v1856_v38 = vld [vmem:[#allocation11 + $0x130] sm:$0xff]  ;;  %v1858_v39 = vld [vmem:[#allocation11 + $0x138] sm:$0xff]  ;;  %v1860_v40 = vld [vmem:[#allocation11 + $0x140] sm:$0xff] }
  0x2b   :  { %2401 = vst [vmem:[#allocation36_spill] sm:$0xff] %v1806_v13  ;;  %v1862_v41 = vld [vmem:[#allocation11 + $0x148] sm:$0xff]  ;;  %v1864_v42 = vld [vmem:[#allocation11 + $0x150] sm:$0xff]  ;;  %v1866_v43 = vld [vmem:[#allocation11 + $0x158] sm:$0xff] }
  0x2c   :  { %2402 = vst [vmem:[#allocation37_spill] sm:$0xff] %v1808_v14  ;;  %v1868_v44 = vld [vmem:[#allocation11 + $0x160] sm:$0xff]  ;;  %v1870_v45 = vld [vmem:[#allocation11 + $0x168] sm:$0xff]  ;;  %v1872_v46 = vld [vmem:[#allocation11 + $0x170] sm:$0xff] }
  0x2d   :  { %2403 = vst [vmem:[#allocation38_spill] sm:$0xff] %v1810_v15  ;;  %v1874_v47 = vld [vmem:[#allocation11 + $0x178] sm:$0xff]  ;;  %v1876_v48 = vld [vmem:[#allocation11 + $0x180] sm:$0xff]  ;;  %v1878_v49 = vld [vmem:[#allocation11 + $0x188] sm:$0xff] }
  0x2e   :  { %2404 = vst [vmem:[#allocation39_spill] sm:$0xff] %v1812_v16  ;;  %v1880_v50 = vld [vmem:[#allocation11 + $0x190] sm:$0xff]  ;;  %v1882_v51 = vld [vmem:[#allocation11 + $0x198] sm:$0xff]  ;;  %v1884_v52 = vld [vmem:[#allocation11 + $0x1a0] sm:$0xff] }
  0x2f   :  { %2405 = vst [vmem:[#allocation40_spill] sm:$0xff] %v1814_v17  ;;  %v1886_v53 = vld [vmem:[#allocation11 + $0x1a8] sm:$0xff]  ;;  %v1888_v54 = vld [vmem:[#allocation11 + $0x1b0] sm:$0xff]  ;;  %v1890_v55 = vld [vmem:[#allocation11 + $0x1b8] sm:$0xff] }
  0x30   :  { %2406 = vst [vmem:[#allocation41_spill] sm:$0xff] %v1816_v18  ;;  %v1892_v56 = vld [vmem:[#allocation11 + $0x1c0] sm:$0xff]  ;;  %v1894_v57 = vld [vmem:[#allocation11 + $0x1c8] sm:$0xff]  ;;  %v1896_v58 = vld [vmem:[#allocation11 + $0x1d0] sm:$0xff] }
  0x31   :  { %2407 = vst [vmem:[#allocation42_spill] sm:$0xff] %v1818_v19  ;;  %v1898_v59 = vld [vmem:[#allocation11 + $0x1d8] sm:$0xff]  ;;  %v1900_v60 = vld [vmem:[#allocation11 + $0x1e0] sm:$0xff]  ;;  %v1902_v61 = vld [vmem:[#allocation11 + $0x1e8] sm:$0xff] }
  0x32   :  { %2408 = vst [vmem:[#allocation43_spill] sm:$0xff] %v1820_v20  ;;  %v1904_v62 = vld [vmem:[#allocation11 + $0x1f0] sm:$0xff]  ;;  %v1906_v63 = vld [vmem:[#allocation11 + $0x1f8] sm:$0xff]  ;;  %v1908_v2 = vld [vmem:[#allocation12] sm:$0xff] }
  0x33   :  { %2409 = vst [vmem:[#allocation44_spill] sm:$0xff] %v1822_v21  ;;  %v1910_v3 = vld [vmem:[#allocation12 + $0x8] sm:$0xff]  ;;  %v1912_v1 = vld [vmem:[#allocation12 + $0x10] sm:$0xff]  ;;  %v1914_v0 = vld [vmem:[#allocation12 + $0x18] sm:$0xff] }
  0x34   :  { %2410 = vst [vmem:[#allocation45_spill] sm:$0xff] %v1824_v22  ;;  %v1916_v6 = vld [vmem:[#allocation12 + $0x20] sm:$0xff]  ;;  %v1918_v7 = vld [vmem:[#allocation12 + $0x28] sm:$0xff]  ;;  %v1920_v5 = vld [vmem:[#allocation12 + $0x30] sm:$0xff] }
  0x35   :  { %2411 = vst [vmem:[#allocation46_spill] sm:$0xff] %v1826_v23  ;;  %v1922_v4 = vld [vmem:[#allocation12 + $0x38] sm:$0xff]  ;;  %v1924_v10 = vld [vmem:[#allocation12 + $0x40] sm:$0xff]  ;;  %v1926_v11 = vld [vmem:[#allocation12 + $0x48] sm:$0xff] }
  0x36   :  { %2412 = vst [vmem:[#allocation47_spill] sm:$0xff] %v1828_v24  ;;  %v1928_v9 = vld [vmem:[#allocation12 + $0x50] sm:$0xff]  ;;  %v150_v8 = vld [vmem:[#allocation9 + $0x60] sm:$0xff] }
  0x37   :  { %2413 = vst [vmem:[#allocation48_spill] sm:$0xff] %v1830_v25 }
  0x38   :  { %2414 = vst [vmem:[#allocation49_spill] sm:$0xff] %v1832_v26 }
  0x39   :  { %2415 = vst [vmem:[#allocation50_spill] sm:$0xff] %v1834_v27 }
  0x3a   :  { %2416 = vst [vmem:[#allocation51_spill] sm:$0xff] %v1836_v28 }
  0x3b   :  { %2417 = vst [vmem:[#allocation52_spill] sm:$0xff] %v1838_v29 }
  0x3c   :  { %2418 = vst [vmem:[#allocation53_spill] sm:$0xff] %v1840_v30 }
  0x3d   :  { %2419 = vst [vmem:[#allocation54_spill] sm:$0xff] %v1842_v31 }
  0x3e   :  { %2420 = vst [vmem:[#allocation55_spill] sm:$0xff] %v1844_v32 }
  0x3f   :  { %2421 = vst [vmem:[#allocation56_spill] sm:$0xff] %v1846_v33 }
  0x40   :  { %2422 = vst [vmem:[#allocation57_spill] sm:$0xff] %v1848_v34 }
  0x41   :  { %2423 = vst [vmem:[#allocation58_spill] sm:$0xff] %v1908_v2  ;;  %v1930_v2 = vld [vmem:[#allocation12 + $0x58] sm:$0xff] }
  0x42   :  { %2424 = vst [vmem:[#allocation59_spill] sm:$0xff] %v1910_v3  ;;  %v1932_v3 = vld [vmem:[#allocation12 + $0x60] sm:$0xff] }
  0x43   :  { %2425 = vst [vmem:[#allocation60_spill] sm:$0xff] %v1912_v1  ;;  %v1934_v1 = vld [vmem:[#allocation12 + $0x68] sm:$0xff] }
  0x44   :  { %2426 = vst [vmem:[#allocation61_spill] sm:$0xff] %v1914_v0  ;;  %v1936_v0 = vld [vmem:[#allocation12 + $0x70] sm:$0xff] }
  0x45   :  { %2427 = vst [vmem:[#allocation62_spill] sm:$0xff] %v1916_v6  ;;  %v1938_v6 = vld [vmem:[#allocation12 + $0x78] sm:$0xff] }
  0x46   :  { %2428 = vst [vmem:[#allocation63_spill] sm:$0xff] %v1918_v7  ;;  %v1940_v7 = vld [vmem:[#allocation12 + $0x80] sm:$0xff] }
  0x47   :  { %2429 = vst [vmem:[#allocation64_spill] sm:$0xff] %v1920_v5  ;;  %v1942_v5 = vld [vmem:[#allocation12 + $0x88] sm:$0xff] }
  0x48   :  { %2430 = vst [vmem:[#allocation65_spill] sm:$0xff] %v1922_v4  ;;  %v1944_v4 = vld [vmem:[#allocation12 + $0x90] sm:$0xff] }
  0x49   :  { %2431 = vst [vmem:[#allocation66_spill] sm:$0xff] %v1924_v10  ;;  %v1946_v10 = vld [vmem:[#allocation12 + $0x98] sm:$0xff] }
  0x4a   :  { %2432 = vst [vmem:[#allocation67_spill] sm:$0xff] %v1926_v11  ;;  %v1948_v11 = vld [vmem:[#allocation12 + $0xa0] sm:$0xff] }
  0x4b   :  { %2433 = vst [vmem:[#allocation68_spill] sm:$0xff] %v1928_v9  ;;  %v1950_v9 = vld [vmem:[#allocation12 + $0xa8] sm:$0xff] }
  0x4c   :  { %2434 = vst [vmem:[#allocation69_spill] sm:$0xff] %v1930_v2  ;;  %v1952_v2 = vld [vmem:[#allocation12 + $0xb0] sm:$0xff] }
  0x4d   :  { %2435 = vst [vmem:[#allocation70_spill] sm:$0xff] %v1932_v3  ;;  %v1954_v3 = vld [vmem:[#allocation12 + $0xb8] sm:$0xff] }
  0x4e   :  { %2436 = vst [vmem:[#allocation71_spill] sm:$0xff] %v1934_v1  ;;  %v1956_v1 = vld [vmem:[#allocation12 + $0xc0] sm:$0xff] }
  0x4f   :  { %2437 = vst [vmem:[#allocation72_spill] sm:$0xff] %v1936_v0  ;;  %v1958_v0 = vld [vmem:[#allocation12 + $0xc8] sm:$0xff] }
  0x50   :  { %2438 = vst [vmem:[#allocation73_spill] sm:$0xff] %v1938_v6  ;;  %v1960_v6 = vld [vmem:[#allocation12 + $0xd0] sm:$0xff] }
  0x51   :  { %2439 = vst [vmem:[#allocation74_spill] sm:$0xff] %v1940_v7  ;;  %v1962_v7 = vld [vmem:[#allocation12 + $0xd8] sm:$0xff] }
  0x52   :  { %2440 = vst [vmem:[#allocation75_spill] sm:$0xff] %v1942_v5  ;;  %v1964_v5 = vld [vmem:[#allocation12 + $0xe0] sm:$0xff] }
  0x53   :  { %2441 = vst [vmem:[#allocation76_spill] sm:$0xff] %v1944_v4  ;;  %v1966_v4 = vld [vmem:[#allocation12 + $0xe8] sm:$0xff] }
  0x54   :  { %2442 = vst [vmem:[#allocation77_spill] sm:$0xff] %v1946_v10  ;;  %v1968_v10 = vld [vmem:[#allocation12 + $0xf0] sm:$0xff] }
  0x55   :  { %2443 = vst [vmem:[#allocation78_spill] sm:$0xff] %v1948_v11  ;;  %v1970_v11 = vld [vmem:[#allocation12 + $0xf8] sm:$0xff] }
  0x56   :  { %2444 = vst [vmem:[#allocation79_spill] sm:$0xff] %v1950_v9  ;;  %v1972_v9 = vld [vmem:[#allocation12 + $0x100] sm:$0xff] }
  0x57   :  { %2445 = vst [vmem:[#allocation80_spill] sm:$0xff] %v1952_v2  ;;  %v1974_v2 = vld [vmem:[#allocation12 + $0x108] sm:$0xff] }
  0x58   :  { %2446 = vst [vmem:[#allocation81_spill] sm:$0xff] %v1954_v3  ;;  %v1976_v3 = vld [vmem:[#allocation12 + $0x110] sm:$0xff] }
  0x59   :  { %2447 = vst [vmem:[#allocation82_spill] sm:$0xff] %v1956_v1  ;;  %v1978_v1 = vld [vmem:[#allocation12 + $0x118] sm:$0xff] }
  0x5a   :  { %2448 = vst [vmem:[#allocation83_spill] sm:$0xff] %v1958_v0  ;;  %v1980_v0 = vld [vmem:[#allocation12 + $0x120] sm:$0xff] }
  0x5b   :  { %2449 = vst [vmem:[#allocation84_spill] sm:$0xff] %v1960_v6  ;;  %v1982_v6 = vld [vmem:[#allocation12 + $0x128] sm:$0xff] }
  0x5c   :  { %2450 = vst [vmem:[#allocation85_spill] sm:$0xff] %v1962_v7  ;;  %v1984_v7 = vld [vmem:[#allocation12 + $0x130] sm:$0xff] }
  0x5d   :  { %2451 = vst [vmem:[#allocation86_spill] sm:$0xff] %v1964_v5  ;;  %v1986_v5 = vld [vmem:[#allocation12 + $0x138] sm:$0xff] }
  0x5e   :  { %2452 = vst [vmem:[#allocation87_spill] sm:$0xff] %v1966_v4  ;;  %v1988_v4 = vld [vmem:[#allocation12 + $0x140] sm:$0xff] }
  0x5f   :  { %2453 = vst [vmem:[#allocation88_spill] sm:$0xff] %v1968_v10  ;;  %v1990_v10 = vld [vmem:[#allocation12 + $0x148] sm:$0xff] }
  0x60   :  { %2454 = vst [vmem:[#allocation89_spill] sm:$0xff] %v1970_v11  ;;  %v1992_v11 = vld [vmem:[#allocation12 + $0x150] sm:$0xff] }
  0x61   :  { %2455 = vst [vmem:[#allocation90_spill] sm:$0xff] %v1972_v9  ;;  %v1994_v9 = vld [vmem:[#allocation12 + $0x158] sm:$0xff] }
  0x62   :  { %2456 = vst [vmem:[#allocation91_spill] sm:$0xff] %v1974_v2  ;;  %v1996_v2 = vld [vmem:[#allocation12 + $0x160] sm:$0xff] }
  0x63   :  { %2457 = vst [vmem:[#allocation92_spill] sm:$0xff] %v1976_v3  ;;  %v1998_v3 = vld [vmem:[#allocation12 + $0x168] sm:$0xff] }
  0x64   :  { %2458 = vst [vmem:[#allocation93_spill] sm:$0xff] %v1978_v1  ;;  %v2000_v1 = vld [vmem:[#allocation12 + $0x170] sm:$0xff] }
  0x65   :  { %2459 = vst [vmem:[#allocation94_spill] sm:$0xff] %v1980_v0  ;;  %v2002_v0 = vld [vmem:[#allocation12 + $0x178] sm:$0xff] }
  0x66   :  { %2460 = vst [vmem:[#allocation95_spill] sm:$0xff] %v1982_v6  ;;  %v2004_v6 = vld [vmem:[#allocation12 + $0x180] sm:$0xff] }
  0x67   :  { %2461 = vst [vmem:[#allocation96_spill] sm:$0xff] %v1984_v7  ;;  %v2006_v7 = vld [vmem:[#allocation12 + $0x188] sm:$0xff] }
  0x68   :  { %2462 = vst [vmem:[#allocation97_spill] sm:$0xff] %v1986_v5  ;;  %v2008_v5 = vld [vmem:[#allocation12 + $0x190] sm:$0xff] }
  0x69   :  { %2463 = vst [vmem:[#allocation98_spill] sm:$0xff] %v1988_v4  ;;  %v2010_v4 = vld [vmem:[#allocation12 + $0x198] sm:$0xff] }
  0x6a   :  { %2464 = vst [vmem:[#allocation99_spill] sm:$0xff] %v1990_v10  ;;  %v2012_v10 = vld [vmem:[#allocation12 + $0x1a0] sm:$0xff] }
  0x6b   :  { %2465 = vst [vmem:[#allocation100_spill] sm:$0xff] %v1992_v11  ;;  %v2014_v11 = vld [vmem:[#allocation12 + $0x1a8] sm:$0xff] }
  0x6c   :  { %2466 = vst [vmem:[#allocation101_spill] sm:$0xff] %v1994_v9  ;;  %v2016_v9 = vld [vmem:[#allocation12 + $0x1b0] sm:$0xff] }
  0x6d   :  { %2467 = vst [vmem:[#allocation102_spill] sm:$0xff] %v1996_v2  ;;  %v2018_v2 = vld [vmem:[#allocation12 + $0x1b8] sm:$0xff] }
  0x6e   :  { %2468 = vst [vmem:[#allocation103_spill] sm:$0xff] %v1998_v3  ;;  %v2020_v3 = vld [vmem:[#allocation12 + $0x1c0] sm:$0xff] }
  0x6f   :  { %2469 = vst [vmem:[#allocation104_spill] sm:$0xff] %v2000_v1  ;;  %v2022_v1 = vld [vmem:[#allocation12 + $0x1c8] sm:$0xff] }
  0x70   :  { %2470 = vst [vmem:[#allocation105_spill] sm:$0xff] %v2002_v0  ;;  %v2024_v0 = vld [vmem:[#allocation12 + $0x1d0] sm:$0xff] }
  0x71   :  { %2471 = vst [vmem:[#allocation106_spill] sm:$0xff] %v2004_v6  ;;  %v2026_v6 = vld [vmem:[#allocation12 + $0x1d8] sm:$0xff] }
  0x72   :  { %2472 = vst [vmem:[#allocation107_spill] sm:$0xff] %v2006_v7  ;;  %v2028_v7 = vld [vmem:[#allocation12 + $0x1e0] sm:$0xff] }
  0x73   :  { %2473 = vst [vmem:[#allocation108_spill] sm:$0xff] %v2008_v5  ;;  %v2030_v5 = vld [vmem:[#allocation12 + $0x1e8] sm:$0xff] }
  0x74   :  { %2474 = vst [vmem:[#allocation109_spill] sm:$0xff] %v2010_v4  ;;  %v2032_v4 = vld [vmem:[#allocation12 + $0x1f0] sm:$0xff] }
  0x75   :  { %2475 = vst [vmem:[#allocation110_spill] sm:$0xff] %v2012_v10  ;;  %v2034_v10 = vld [vmem:[#allocation12 + $0x1f8] sm:$0xff] }
  0x76   :  { %2476 = vst [vmem:[#allocation111_spill] sm:$0xff] %v2014_v11  ;;  %v148_v11 = vld [vmem:[#allocation9 + $0x50] sm:$0xff] }
  0x77   :  { %2477 = vst [vmem:[#allocation112_spill] sm:$0xff] %v2016_v9  ;;  %v2039_v9 = vld [vmem:[%s2376_s4] sm:$0xf]  ;;  %275 = vmatpush.msra.mxu2 %v148_v11 }
  0x78   :  { %2478 = vst [vmem:[#allocation113_spill] sm:$0xff] %v2018_v2  ;;  %v2044_v2 = vld [vmem:[%s2378_s6] sm:$0xf] }
  0x79   :  { %2479 = vst [vmem:[#allocation114_spill] sm:$0xff] %v2020_v3  ;;  %v2051_v3 = vld [vmem:[#allocation6] sm:$0xff] }
  0x7a   :  { %2480 = vst [vmem:[#allocation115_spill] sm:$0xff] %v2022_v1  ;;  %v141_v1 = vld [vmem:[#allocation9 + $0x18] sm:$0xff]  ;;  %v138_v11 = vld [vmem:[#allocation9] sm:$0xff] }
  0x7b   :  { %2481 = vst [vmem:[#allocation116_spill] sm:$0xff] %v2024_v0  ;;  %v2049_v0 = vld [vmem:[%s2373_s1] sm:$0xff]  ;;  %s2133_s1 = smov 0  }
  0x7c   :  { %2482 = vst [vmem:[#allocation117_spill] sm:$0xff] %v2026_v6  ;;  %v140_v6 = vld [vmem:[#allocation9 + $0x10] sm:$0xff] }
  0x7d   :  { %2483 = vst [vmem:[#allocation118_spill] sm:$0xff] %v2028_v7  ;;  %276 = vmatpush.msra.mxu2 %v140_v6  ;;  %v145_v7 = vld [vmem:[#allocation9 + $0x38] sm:$0xff]  ;;  %v151_v6 = vld [vmem:[#allocation9 + $0x68] sm:$0xff] }
  0x7e   :  { %2484 = vst [vmem:[#allocation119_spill] sm:$0xff] %v2030_v5  ;;  %v146_v5 = vld [vmem:[#allocation9 + $0x40] sm:$0xff]  ;;  %1284 = vmatmul.msk.f32.vlgmr.msra.gmra.mxu2 %vm154_vm0, %v2051_v3 }
  0x7f   :  { %2485 = vst [vmem:[#allocation120_spill] sm:$0xff] %v2032_v4  ;;  %v149_v4 = vld [vmem:[#allocation9 + $0x58] sm:$0xff]  ;;  %193 = vmatpush.msra.mxu0 %v146_v5  ;;  %v143_v5 = vld [vmem:[#allocation9 + $0x28] sm:$0xff] }
  0x80   :  { %2486 = vst [vmem:[#allocation121_spill] sm:$0xff] %v2034_v10  ;;  %316 = vmatpush.msra.mxu3 %v149_v4  ;;  %v153_v10 = vld [vmem:[#allocation9 + $0x78] sm:$0xff]  ;;  %v144_v4 = vld [vmem:[#allocation9 + $0x30] sm:$0xff] }
  0x81   :  { %2487 = vst [vmem:[#allocation122_spill] sm:$0xff] %v2039_v9  ;;  %v152_v9 = vld [vmem:[#allocation9 + $0x70] sm:$0xff]  ;;  %194 = vmatpush.msra.mxu0 %v138_v11  ;;  %v137_v11 = vld [vmem:[#allocation6 + $0x38] sm:$0xff] }
  0x82   :  { %2488 = vst [vmem:[#allocation123_spill] sm:$0xff] %v2044_v2  ;;  %317 = vmatpush.msra.mxu3 %v141_v1  ;;  %v147_v2 = vld [vmem:[#allocation9 + $0x48] sm:$0xff]  ;;  %439 = vmatpush.msrb.mxu2 %v152_v9  ;;  %v142_v9 = vld [vmem:[#allocation9 + $0x20] sm:$0xff] }
  0x83   :  { %2489 = vst [vmem:[#allocation124_spill] sm:$0xff] %v2049_v0  ;;  %1292 = vmatmul.msk.f32.vlgmr.msra.gmra.mxu3 %vm154_vm0, %v2051_v3  ;;  %v139_v0 = vld [vmem:[#allocation9 + $0x8] sm:$0xff]  ;;  %234 = vmatpush.msra.mxu1 %v147_v2  ;;  %v133_v2 = vld [vmem:[#allocation6 + $0x18] sm:$0xff] }
  0x84   :  { %480 = vmatpush.msrb.mxu3 %v153_v10  ;;  %440 = vmatpush.msrb.mxu2 %v144_v4  ;;  %v131_v1 = vld [vmem:[#allocation6 + $0x8] sm:$0xff]  ;;  %v136_v10 = vld [vmem:[#allocation6 + $0x30] sm:$0xff] }
  0x85   :  { %235 = vmatpush.msra.mxu1 %v139_v0  ;;  %1268 = vmatmul.msk.f32.vlgmr.msra.gmra.mxu0 %vm154_vm0, %v2051_v3  ;;  %v132_v0 = vld [vmem:[#allocation6 + $0x10] sm:$0xff] }
  0x86   :  { %481 = vmatpush.msrb.mxu3 %v145_v7  ;;  %1276 = vmatmul.msk.f32.vlgmr.msra.gmra.mxu1 %vm154_vm0, %v2051_v3  ;;  %v134_v7 = vld [vmem:[#allocation6 + $0x20] sm:$0xff] }
  0x87   :  { %357 = vmatpush.msrb.mxu0 %v150_v8  ;;  %398 = vmatpush.msrb.mxu1 %v151_v6  ;;  %v135_v8 = vld [vmem:[#allocation6 + $0x28] sm:$0xff] }
  0x88   :  { %1285 = vmatmul.msk.f32.gmra.mxu2 %vm154_vm0, %v131_v1 }
  0x89   :  { %358 = vmatpush.msrb.mxu0 %v142_v9  ;;  %399 = vmatpush.msrb.mxu1 %v143_v5 }
  0x8b   :  { %1293 = vmatmul.msk.f32.gmra.mxu3 %vm154_vm0, %v131_v1 }
  0x8d   :  { %1269 = vmatmul.msk.f32.gmra.mxu0 %vm154_vm0, %v131_v1 }
  0x8e   :  { %1277 = vmatmul.msk.f32.gmra.mxu1 %vm154_vm0, %v131_v1 }
  0x90   :  { %1286 = vmatmul.msk.f32.gmra.mxu2 %vm154_vm0, %v132_v0 }
  0x93   :  { %1294 = vmatmul.msk.f32.gmra.mxu3 %vm154_vm0, %v132_v0 }
  0x95   :  { %1270 = vmatmul.msk.f32.gmra.mxu0 %vm154_vm0, %v132_v0 }
  0x96   :  { %1278 = vmatmul.msk.f32.gmra.mxu1 %vm154_vm0, %v132_v0 }
  0x98   :  { %1287 = vmatmul.msk.f32.gmra.mxu2 %vm154_vm0, %v133_v2 }
  0x9b   :  { %1295 = vmatmul.msk.f32.gmra.mxu3 %vm154_vm0, %v133_v2 }
  0x9d   :  { %1271 = vmatmul.msk.f32.gmra.mxu0 %vm154_vm0, %v133_v2 }
  0x9e   :  { %1279 = vmatmul.msk.f32.gmra.mxu1 %vm154_vm0, %v133_v2 }
  0xa0   :  { %1288 = vmatmul.msk.f32.gmra.mxu2 %vm154_vm0, %v134_v7 }
  0xa3   :  { %1296 = vmatmul.msk.f32.gmra.mxu3 %vm154_vm0, %v134_v7 }
  0xa5   :  { %1272 = vmatmul.msk.f32.gmra.mxu0 %vm154_vm0, %v134_v7 }
  0xa6   :  { %1280 = vmatmul.msk.f32.gmra.mxu1 %vm154_vm0, %v134_v7 }
  0xa8   :  { %1289 = vmatmul.msk.f32.gmra.mxu2 %vm154_vm0, %v135_v8 }
  0xab   :  { %1297 = vmatmul.msk.f32.gmra.mxu3 %vm154_vm0, %v135_v8 }
  0xad   :  { %1273 = vmatmul.msk.f32.gmra.mxu0 %vm154_vm0, %v135_v8 }
  0xae   :  { %1281 = vmatmul.msk.f32.gmra.mxu1 %vm154_vm0, %v135_v8 }
  0xb0   :  { %1290 = vmatmul.msk.f32.gmra.mxu2 %vm154_vm0, %v136_v10 }
  0xb3   :  { %1298 = vmatmul.msk.f32.gmra.mxu3 %vm154_vm0, %v136_v10 }
  0xb5   :  { %1274 = vmatmul.msk.f32.gmra.mxu0 %vm154_vm0, %v136_v10 }
  0xb6   :  { %1282 = vmatmul.msk.f32.gmra.mxu1 %vm154_vm0, %v136_v10 }
  0xb8   :  { %1291 = vmatmul.msk.f32.gmra.mxu2 %vm154_vm0, %v137_v11 }
  0xbb   :  { %1299 = vmatmul.msk.f32.gmra.mxu3 %vm154_vm0, %v137_v11 }
  0xbd   :  { %1275 = vmatmul.msk.f32.gmra.mxu0 %vm154_vm0, %v137_v11 }
  0xbe   :  { %1283 = vmatmul.msk.f32.gmra.mxu1 %vm154_vm0, %v137_v11 }
  0xc0   :  { %1316 = vmatmul.msk.f32.vlgmr.msrb.gmra.mxu2 %vm154_vm0, %v2051_v3 }
  0xc3   :  { %1324 = vmatmul.msk.f32.vlgmr.msrb.gmra.mxu3 %vm154_vm0, %v2051_v3 }
  0xc5   :  { %1300 = vmatmul.msk.f32.vlgmr.msrb.gmra.mxu0 %vm154_vm0, %v2051_v3 }
  0xc6   :  { %1308 = vmatmul.msk.f32.vlgmr.msrb.gmra.mxu1 %vm154_vm0, %v2051_v3 }
  0xc8   :  { %1317 = vmatmul.msk.f32.gmra.mxu2 %vm154_vm0, %v131_v1 }
  0xcb   :  { %1325 = vmatmul.msk.f32.gmra.mxu3 %vm154_vm0, %v131_v1 }
  0xcd   :  { %1301 = vmatmul.msk.f32.gmra.mxu0 %vm154_vm0, %v131_v1 }
  0xce   :  { %1309 = vmatmul.msk.f32.gmra.mxu1 %vm154_vm0, %v131_v1 }
  0xd0   :  { %1318 = vmatmul.msk.f32.gmra.mxu2 %vm154_vm0, %v132_v0 }
  0xd3   :  { %1326 = vmatmul.msk.f32.gmra.mxu3 %vm154_vm0, %v132_v0 }
  0xd5   :  { %1302 = vmatmul.msk.f32.gmra.mxu0 %vm154_vm0, %v132_v0 }
  0xd6   :  { %1310 = vmatmul.msk.f32.gmra.mxu1 %vm154_vm0, %v132_v0 }
  0xd8   :  { %1319 = vmatmul.msk.f32.gmra.mxu2 %vm154_vm0, %v133_v2 }
  0xdb   :  { %1327 = vmatmul.msk.f32.gmra.mxu3 %vm154_vm0, %v133_v2 }
  0xdd   :  { %1303 = vmatmul.msk.f32.gmra.mxu0 %vm154_vm0, %v133_v2 }
  0xde   :  { %1311 = vmatmul.msk.f32.gmra.mxu1 %vm154_vm0, %v133_v2 }
  0xe0   :  { %1320 = vmatmul.msk.f32.gmra.mxu2 %vm154_vm0, %v134_v7 }
  0xe3   :  { %1328 = vmatmul.msk.f32.gmra.mxu3 %vm154_vm0, %v134_v7 }
  0xe5   :  { %1304 = vmatmul.msk.f32.gmra.mxu0 %vm154_vm0, %v134_v7 }
  0xe6   :  { %1312 = vmatmul.msk.f32.gmra.mxu1 %vm154_vm0, %v134_v7 }
  0xe8   :  { %1321 = vmatmul.msk.f32.gmra.mxu2 %vm154_vm0, %v135_v8 }
  0xeb   :  { %1329 = vmatmul.msk.f32.gmra.mxu3 %vm154_vm0, %v135_v8 }
  0xed   :  { %1305 = vmatmul.msk.f32.gmra.mxu0 %vm154_vm0, %v135_v8 }
  0xee   :  { %1313 = vmatmul.msk.f32.gmra.mxu1 %vm154_vm0, %v135_v8 }
  0xf0   :  { %1322 = vmatmul.msk.f32.gmra.mxu2 %vm154_vm0, %v136_v10 }
  0xf3   :  { %1330 = vmatmul.msk.f32.gmra.mxu3 %vm154_vm0, %v136_v10 }
  0xf5   :  { %1306 = vmatmul.msk.f32.gmra.mxu0 %vm154_vm0, %v136_v10 }
  0xf6   :  { %1314 = vmatmul.msk.f32.gmra.mxu1 %vm154_vm0, %v136_v10 }
  0xf8   :  { %1323 = vmatmul.msk.f32.gmra.mxu2 %vm154_vm0, %v137_v11 }
  0xfb   :  { %1331 = vmatmul.msk.f32.gmra.mxu3 %vm154_vm0, %v137_v11 }
  0xfd   :  { %1307 = vmatmul.msk.f32.gmra.mxu0 %vm154_vm0, %v137_v11 }
  0xfe   :  { %1315 = vmatmul.msk.f32.gmra.mxu1 %vm154_vm0, %v137_v11 }
 0x101   :  { %v278_v6 = vpop.f32.mrf.mxu2 }
 0x102   :  { %v196_v3 = vpop.f32.mrf.mxu0  ;;  %509 = vst [vmem:[#allocation2 + $0x10] sm:$0xff] %v278_v6 }
 0x103   :  { %507 = vst [vmem:[#allocation2] sm:$0xff] %v196_v3  ;;  %v237_v4 = vpop.f32.mrf.mxu1 }
 0x104   :  { %508 = vst [vmem:[#allocation2 + $0x8] sm:$0xff] %v237_v4 }
 0x106   :  { %v319_v1 = vpop.f32.mrf.mxu3 }
 0x107   :  { %510 = vst [vmem:[#allocation2 + $0x18] sm:$0xff] %v319_v1 }
 0x10a   :  { %v199_v9 = vpop.f32.mrf.mxu0 }
 0x10b   :  { %511 = vst [vmem:[#allocation2 + $0x20] sm:$0xff] %v199_v9  ;;  %v240_v5 = vpop.f32.mrf.mxu1  ;;  %v281_v0 = vpop.f32.mrf.mxu2 }
 0x10c   :  { %512 = vst [vmem:[#allocation2 + $0x28] sm:$0xff] %v240_v5 }
 0x10d   :  { %513 = vst [vmem:[#allocation2 + $0x30] sm:$0xff] %v281_v0 }
 0x10e   :  { %v322_v2 = vpop.f32.mrf.mxu3 }
 0x10f   :  { %514 = vst [vmem:[#allocation2 + $0x38] sm:$0xff] %v322_v2 }
 0x112   :  { %v202_v7 = vpop.f32.mrf.mxu0 }
 0x113   :  { %515 = vst [vmem:[#allocation2 + $0x40] sm:$0xff] %v202_v7  ;;  %v243_v8 = vpop.f32.mrf.mxu1  ;;  %v284_v10 = vpop.f32.mrf.mxu2 }
 0x114   :  { %516 = vst [vmem:[#allocation2 + $0x48] sm:$0xff] %v243_v8 }
 0x115   :  { %517 = vst [vmem:[#allocation2 + $0x50] sm:$0xff] %v284_v10 }
 0x116   :  { %v325_v11 = vpop.f32.mrf.mxu3 }
 0x117   :  { %518 = vst [vmem:[#allocation2 + $0x58] sm:$0xff] %v325_v11 }
 0x11a   :  { %v205_v3 = vpop.f32.mrf.mxu0 }
 0x11b   :  { %519 = vst [vmem:[#allocation2 + $0x60] sm:$0xff] %v205_v3  ;;  %v246_v4 = vpop.f32.mrf.mxu1  ;;  %v287_v6 = vpop.f32.mrf.mxu2 }
 0x11c   :  { %520 = vst [vmem:[#allocation2 + $0x68] sm:$0xff] %v246_v4 }
 0x11d   :  { %521 = vst [vmem:[#allocation2 + $0x70] sm:$0xff] %v287_v6 }
 0x11e   :  { %v328_v1 = vpop.f32.mrf.mxu3 }
 0x11f   :  { %522 = vst [vmem:[#allocation2 + $0x78] sm:$0xff] %v328_v1 }
 0x122   :  { %v208_v9 = vpop.f32.mrf.mxu0 }
 0x123   :  { %523 = vst [vmem:[#allocation2 + $0x80] sm:$0xff] %v208_v9  ;;  %v249_v5 = vpop.f32.mrf.mxu1  ;;  %v290_v0 = vpop.f32.mrf.mxu2 }
 0x124   :  { %524 = vst [vmem:[#allocation2 + $0x88] sm:$0xff] %v249_v5 }
 0x125   :  { %525 = vst [vmem:[#allocation2 + $0x90] sm:$0xff] %v290_v0 }
 0x126   :  { %v331_v2 = vpop.f32.mrf.mxu3 }
 0x127   :  { %526 = vst [vmem:[#allocation2 + $0x98] sm:$0xff] %v331_v2 }
 0x12a   :  { %v211_v7 = vpop.f32.mrf.mxu0 }
 0x12b   :  { %527 = vst [vmem:[#allocation2 + $0xa0] sm:$0xff] %v211_v7  ;;  %v252_v8 = vpop.f32.mrf.mxu1  ;;  %v293_v10 = vpop.f32.mrf.mxu2 }
 0x12c   :  { %528 = vst [vmem:[#allocation2 + $0xa8] sm:$0xff] %v252_v8 }
 0x12d   :  { %529 = vst [vmem:[#allocation2 + $0xb0] sm:$0xff] %v293_v10 }
 0x12e   :  { %v334_v11 = vpop.f32.mrf.mxu3 }
 0x12f   :  { %530 = vst [vmem:[#allocation2 + $0xb8] sm:$0xff] %v334_v11 }
 0x132   :  { %v214_v3 = vpop.f32.mrf.mxu0 }
 0x133   :  { %531 = vst [vmem:[#allocation2 + $0xc0] sm:$0xff] %v214_v3  ;;  %v255_v4 = vpop.f32.mrf.mxu1  ;;  %v296_v6 = vpop.f32.mrf.mxu2 }
 0x134   :  { %532 = vst [vmem:[#allocation2 + $0xc8] sm:$0xff] %v255_v4 }
 0x135   :  { %533 = vst [vmem:[#allocation2 + $0xd0] sm:$0xff] %v296_v6 }
 0x136   :  { %v337_v1 = vpop.f32.mrf.mxu3 }
 0x137   :  { %534 = vst [vmem:[#allocation2 + $0xd8] sm:$0xff] %v337_v1 }
 0x13a   :  { %v217_v9 = vpop.f32.mrf.mxu0 }
 0x13b   :  { %535 = vst [vmem:[#allocation2 + $0xe0] sm:$0xff] %v217_v9  ;;  %v258_v5 = vpop.f32.mrf.mxu1  ;;  %v299_v0 = vpop.f32.mrf.mxu2 }
 0x13c   :  { %536 = vst [vmem:[#allocation2 + $0xe8] sm:$0xff] %v258_v5 }
 0x13d   :  { %537 = vst [vmem:[#allocation2 + $0xf0] sm:$0xff] %v299_v0 }
 0x13e   :  { %v340_v2 = vpop.f32.mrf.mxu3 }
 0x13f   :  { %538 = vst [vmem:[#allocation2 + $0xf8] sm:$0xff] %v340_v2 }
 0x142   :  { %v360_v7 = vpop.f32.mrf.mxu0 }
 0x143   :  { %539 = vst [vmem:[#allocation3] sm:$0xff] %v360_v7  ;;  %v401_v8 = vpop.f32.mrf.mxu1  ;;  %v442_v10 = vpop.f32.mrf.mxu2 }
 0x144   :  { %540 = vst [vmem:[#allocation3 + $0x8] sm:$0xff] %v401_v8 }
 0x145   :  { %541 = vst [vmem:[#allocation3 + $0x10] sm:$0xff] %v442_v10 }
 0x146   :  { %v483_v11 = vpop.f32.mrf.mxu3 }
 0x147   :  { %542 = vst [vmem:[#allocation3 + $0x18] sm:$0xff] %v483_v11 }
 0x14a   :  { %v363_v3 = vpop.f32.mrf.mxu0 }
 0x14b   :  { %543 = vst [vmem:[#allocation3 + $0x20] sm:$0xff] %v363_v3  ;;  %v404_v4 = vpop.f32.mrf.mxu1  ;;  %v445_v6 = vpop.f32.mrf.mxu2 }
 0x14c   :  { %544 = vst [vmem:[#allocation3 + $0x28] sm:$0xff] %v404_v4 }
 0x14d   :  { %545 = vst [vmem:[#allocation3 + $0x30] sm:$0xff] %v445_v6 }
 0x14e   :  { %v486_v1 = vpop.f32.mrf.mxu3 }
 0x14f   :  { %546 = vst [vmem:[#allocation3 + $0x38] sm:$0xff] %v486_v1 }
 0x152   :  { %v366_v9 = vpop.f32.mrf.mxu0 }
 0x153   :  { %547 = vst [vmem:[#allocation3 + $0x40] sm:$0xff] %v366_v9  ;;  %v407_v5 = vpop.f32.mrf.mxu1  ;;  %v448_v0 = vpop.f32.mrf.mxu2 }
 0x154   :  { %548 = vst [vmem:[#allocation3 + $0x48] sm:$0xff] %v407_v5 }
 0x155   :  { %549 = vst [vmem:[#allocation3 + $0x50] sm:$0xff] %v448_v0 }
 0x156   :  { %v489_v2 = vpop.f32.mrf.mxu3 }
 0x157   :  { %550 = vst [vmem:[#allocation3 + $0x58] sm:$0xff] %v489_v2 }
 0x15a   :  { %v369_v7 = vpop.f32.mrf.mxu0 }
 0x15b   :  { %551 = vst [vmem:[#allocation3 + $0x60] sm:$0xff] %v369_v7  ;;  %v410_v8 = vpop.f32.mrf.mxu1  ;;  %v451_v10 = vpop.f32.mrf.mxu2 }
 0x15c   :  { %552 = vst [vmem:[#allocation3 + $0x68] sm:$0xff] %v410_v8 }
 0x15d   :  { %553 = vst [vmem:[#allocation3 + $0x70] sm:$0xff] %v451_v10 }
 0x15e   :  { %v492_v11 = vpop.f32.mrf.mxu3 }
 0x15f   :  { %554 = vst [vmem:[#allocation3 + $0x78] sm:$0xff] %v492_v11 }
 0x162   :  { %v372_v3 = vpop.f32.mrf.mxu0 }
 0x163   :  { %555 = vst [vmem:[#allocation3 + $0x80] sm:$0xff] %v372_v3  ;;  %v413_v4 = vpop.f32.mrf.mxu1  ;;  %v454_v6 = vpop.f32.mrf.mxu2 }
 0x164   :  { %556 = vst [vmem:[#allocation3 + $0x88] sm:$0xff] %v413_v4 }
 0x165   :  { %557 = vst [vmem:[#allocation3 + $0x90] sm:$0xff] %v454_v6 }
 0x166   :  { %v495_v1 = vpop.f32.mrf.mxu3 }
 0x167   :  { %558 = vst [vmem:[#allocation3 + $0x98] sm:$0xff] %v495_v1 }
 0x16a   :  { %v375_v9 = vpop.f32.mrf.mxu0 }
 0x16b   :  { %559 = vst [vmem:[#allocation3 + $0xa0] sm:$0xff] %v375_v9  ;;  %v416_v5 = vpop.f32.mrf.mxu1  ;;  %v457_v0 = vpop.f32.mrf.mxu2  ;;  %v2125_v9 = vmov 0.0  }
 0x16c   :  { %560 = vst [vmem:[#allocation3 + $0xa8] sm:$0xff] %v416_v5  ;;  %v2127_v5 = vmov 0.0  }
 0x16d   :  { %561 = vst [vmem:[#allocation3 + $0xb0] sm:$0xff] %v457_v0  ;;  %v2129_v0 = vmov 0.0  }
 0x16e   :  { %v498_v2 = vpop.f32.mrf.mxu3 }
 0x16f   :  { %562 = vst [vmem:[#allocation3 + $0xb8] sm:$0xff] %v498_v2  ;;  %v2131_v2 = vmov 0.0  }
 0x172   :  { %v378_v7 = vpop.f32.mrf.mxu0 }
 0x173   :  { %563 = vst [vmem:[#allocation3 + $0xc0] sm:$0xff] %v378_v7  ;;  %v419_v8 = vpop.f32.mrf.mxu1  ;;  %v460_v10 = vpop.f32.mrf.mxu2 }
 0x174   :  { %564 = vst [vmem:[#allocation3 + $0xc8] sm:$0xff] %v419_v8 }
 0x175   :  { %565 = vst [vmem:[#allocation3 + $0xd0] sm:$0xff] %v460_v10 }
 0x176   :  { %v501_v11 = vpop.f32.mrf.mxu3 }
 0x177   :  { %566 = vst [vmem:[#allocation3 + $0xd8] sm:$0xff] %v501_v11 }
 0x17a   :  { %v381_v3 = vpop.f32.mrf.mxu0 }
 0x17b   :  { %567 = vst [vmem:[#allocation3 + $0xe0] sm:$0xff] %v381_v3  ;;  %v422_v4 = vpop.f32.mrf.mxu1  ;;  %v463_v6 = vpop.f32.mrf.mxu2 }
 0x17c   :  { %568 = vst [vmem:[#allocation3 + $0xe8] sm:$0xff] %v422_v4 }
 0x17d   :  { %569 = vst [vmem:[#allocation3 + $0xf0] sm:$0xff] %v463_v6 }
 0x17e   :  { %v504_v1 = vpop.f32.mrf.mxu3 }
 0x17f   :  { %570 = vst [vmem:[#allocation3 + $0xf8] sm:$0xff] %v504_v1 }
 0x180 LB: > { %720 = vmatpush.msra.mxu0 %v1900_v60  ;;  %740 = vmatpush.msra.mxu1 %v1902_v61  ;;  %v2490_v32 = vld [vmem:[#allocation55_spill] sm:$0xff]  ;;  %v2491_v33 = vld [vmem:[#allocation56_spill] sm:$0xff]  ;;  %v2492_v34 = vld [vmem:[#allocation57_spill] sm:$0xff]  ;;  %s2279_s4 = ssub.s32 7, %s1682_s1  ;;  %s1344_s6 = sshll.u32 %s1682_s1, 5  ;;  %s1682_s1 = sphi %s2133_s1, %s707_s1   ;;  %v1678_v2 = vphi %v2131_v2, %v2340_v2   ;;  %v1674_v0 = vphi %v2129_v0, %v2332_v0   ;;  %v1670_v5 = vphi %v2127_v5, %v1069_v5   ;;  %v1666_v9 = vphi %v2125_v9, %v1070_v9  }
 0x181   : > { %780 = vmatpush.msra.mxu3 %v1906_v63  ;;  %760 = vmatpush.msra.mxu2 %v1904_v62  ;;  %v2493_v28 = vld [vmem:[#allocation51_spill] sm:$0xff]  ;;  %v2494_v29 = vld [vmem:[#allocation52_spill] sm:$0xff]  ;;  %v2495_v31 = vld [vmem:[#allocation54_spill] sm:$0xff]  ;;  %s715_s28 = scalar_lea.vmem [#allocation2], %s1344_s6  ;;  %s1345_s29 = sshll.u32 %s2279_s4, 5 }
 0x182   : > { %721 = vmatpush.msra.mxu0 %v1892_v56  ;;  %741 = vmatpush.msra.mxu1 %v1894_v57  ;;  %v2496_v30 = vld [vmem:[#allocation53_spill] sm:$0xff]  ;;  %v2497_v24 = vld [vmem:[#allocation47_spill] sm:$0xff]  ;;  %v2498_v25 = vld [vmem:[#allocation48_spill] sm:$0xff]  ;;  %s2302_s30 = scalar_lea.vmem [#allocation3], %s1345_s29  ;;  %s1337_s11 = sshll.u32 %s1682_s1, 3 }
 0x183   : > { %781 = vmatpush.msra.mxu3 %v1898_v59  ;;  %761 = vmatpush.msra.mxu2 %v1896_v58  ;;  %v2499_v27 = vld [vmem:[#allocation50_spill] sm:$0xff]  ;;  %v2500_v26 = vld [vmem:[#allocation49_spill] sm:$0xff]  ;;  %v2501_v20 = vld [vmem:[#allocation43_spill] sm:$0xff]  ;;  %s889_s12 = scalar_lea.vmem [#allocation4], %s1337_s11  ;;  %s1343_s13 = sshll.u32 %s2279_s4, 3 }
 0x184   : > { %722 = vmatpush.msra.mxu0 %v1884_v52  ;;  %742 = vmatpush.msra.mxu1 %v1886_v53  ;;  %v2502_v21 = vld [vmem:[#allocation44_spill] sm:$0xff]  ;;  %v2503_v23 = vld [vmem:[#allocation46_spill] sm:$0xff]  ;;  %v2504_v22 = vld [vmem:[#allocation45_spill] sm:$0xff]  ;;  %s1067_s0 = scalar_lea.vmem [#allocation5], %s1343_s13 }
 0x185   : > { %782 = vmatpush.msra.mxu3 %v1890_v55  ;;  %762 = vmatpush.msra.mxu2 %v1888_v54  ;;  %v2505_v16 = vld [vmem:[#allocation39_spill] sm:$0xff]  ;;  %v2506_v17 = vld [vmem:[#allocation40_spill] sm:$0xff]  ;;  %v2507_v19 = vld [vmem:[#allocation42_spill] sm:$0xff] }
 0x186   : > { %723 = vmatpush.msra.mxu0 %v1876_v48  ;;  %743 = vmatpush.msra.mxu1 %v1878_v49  ;;  %v2508_v18 = vld [vmem:[#allocation41_spill] sm:$0xff]  ;;  %v2509_v12 = vld [vmem:[#allocation35_spill] sm:$0xff]  ;;  %v2510_v13 = vld [vmem:[#allocation36_spill] sm:$0xff] }
 0x187   : > { %783 = vmatpush.msra.mxu3 %v1882_v51  ;;  %763 = vmatpush.msra.mxu2 %v1880_v50  ;;  %v2511_v15 = vld [vmem:[#allocation38_spill] sm:$0xff]  ;;  %v2512_v14 = vld [vmem:[#allocation37_spill] sm:$0xff]  ;;  %v2513_v7 = vld [vmem:[#allocation31_spill] sm:$0xff] }
 0x188   : > { %724 = vmatpush.msra.mxu0 %v1868_v44  ;;  %744 = vmatpush.msra.mxu1 %v1870_v45  ;;  %v2514_v8 = vld [vmem:[#allocation32_spill] sm:$0xff]  ;;  %v2515_v10 = vld [vmem:[#allocation34_spill] sm:$0xff]  ;;  %v2516_v11 = vld [vmem:[#allocation33_spill] sm:$0xff] }
 0x189   : > { %784 = vmatpush.msra.mxu3 %v1874_v47  ;;  %764 = vmatpush.msra.mxu2 %v1872_v46  ;;  %v2517_v3 = vld [vmem:[#allocation27_spill] sm:$0xff]  ;;  %v2518_v4 = vld [vmem:[#allocation28_spill] sm:$0xff]  ;;  %v2519_v6 = vld [vmem:[#allocation30_spill] sm:$0xff] }
 0x18a   : > { %725 = vmatpush.msra.mxu0 %v1860_v40  ;;  %745 = vmatpush.msra.mxu1 %v1862_v41  ;;  %v2520_v1 = vld [vmem:[#allocation29_spill] sm:$0xff] }
 0x18b   : > { %785 = vmatpush.msra.mxu3 %v1866_v43  ;;  %765 = vmatpush.msra.mxu2 %v1864_v42 }
 0x18c   : > { %726 = vmatpush.msra.mxu0 %v1852_v36  ;;  %746 = vmatpush.msra.mxu1 %v1854_v37 }
 0x18d   : > { %786 = vmatpush.msra.mxu3 %v1858_v39  ;;  %766 = vmatpush.msra.mxu2 %v1856_v38 }
 0x18e   : > { %727 = vmatpush.msra.mxu0 %v2490_v32  ;;  %747 = vmatpush.msra.mxu1 %v2491_v33  ;;  %v897_v32 = vld [vmem:[%s2302_s30 + $0x18] sm:$0xff] }
 0x18f   : > { %787 = vmatpush.msra.mxu3 %v1850_v35  ;;  %767 = vmatpush.msra.mxu2 %v2492_v34 }
 0x190   : > { %728 = vmatpush.msra.mxu0 %v2493_v28  ;;  %748 = vmatpush.msra.mxu1 %v2494_v29 }
 0x191   : > { %788 = vmatpush.msra.mxu3 %v2495_v31  ;;  %768 = vmatpush.msra.mxu2 %v2496_v30 }
 0x192   : > { %729 = vmatpush.msra.mxu0 %v2497_v24  ;;  %749 = vmatpush.msra.mxu1 %v2498_v25 }
 0x193   : > { %789 = vmatpush.msra.mxu3 %v2499_v27  ;;  %769 = vmatpush.msra.mxu2 %v2500_v26 }
 0x194   : > { %730 = vmatpush.msra.mxu0 %v2501_v20  ;;  %750 = vmatpush.msra.mxu1 %v2502_v21 }
 0x195   : > { %790 = vmatpush.msra.mxu3 %v2503_v23  ;;  %770 = vmatpush.msra.mxu2 %v2504_v22 }
 0x196   : > { %731 = vmatpush.msra.mxu0 %v2505_v16  ;;  %751 = vmatpush.msra.mxu1 %v2506_v17 }
 0x197   : > { %791 = vmatpush.msra.mxu3 %v2507_v19  ;;  %771 = vmatpush.msra.mxu2 %v2508_v18 }
 0x198   : > { %732 = vmatpush.msra.mxu0 %v2509_v12  ;;  %752 = vmatpush.msra.mxu1 %v2510_v13  ;;  %v2521_v12 = vld [vmem:[#allocation23_spill] sm:$0xff]  ;;  %v2522_v13 = vld [vmem:[#allocation24_spill] sm:$0xff] }
 0x199   : > { %792 = vmatpush.msra.mxu3 %v2511_v15  ;;  %772 = vmatpush.msra.mxu2 %v2512_v14  ;;  %v2523_v14 = vld [vmem:[#allocation26_spill] sm:$0xff] }
 0x19a   : > { %733 = vmatpush.msra.mxu0 %v2513_v7  ;;  %753 = vmatpush.msra.mxu1 %v2514_v8  ;;  %v2524_v7 = vld [vmem:[#allocation118_spill] sm:$0xff]  ;;  %v2525_v8 = vld [vmem:[#allocation119_spill] sm:$0xff] }
 0x19b   : > { %793 = vmatpush.msra.mxu3 %v2515_v10  ;;  %773 = vmatpush.msra.mxu2 %v2516_v11  ;;  %v2526_v10 = vld [vmem:[#allocation121_spill] sm:$0xff]  ;;  %v2527_v11 = vld [vmem:[#allocation114_spill] sm:$0xff] }
 0x19c   : > { %734 = vmatpush.msra.mxu0 %v2517_v3  ;;  %754 = vmatpush.msra.mxu1 %v2518_v4  ;;  %v2528_v3 = vld [vmem:[#allocation115_spill] sm:$0xff]  ;;  %v2529_v4 = vld [vmem:[#allocation117_spill] sm:$0xff] }
 0x19d   : > { %794 = vmatpush.msra.mxu3 %v2519_v6  ;;  %774 = vmatpush.msra.mxu2 %v2520_v1  ;;  %v2530_v6 = vld [vmem:[#allocation110_spill] sm:$0xff] }
 0x19e   : > { %735 = vmatpush.msra.mxu0 %v2521_v12  ;;  %755 = vmatpush.msra.mxu1 %v2522_v13  ;;  %v2531_v12 = vld [vmem:[#allocation25_spill] sm:$0xff]  ;;  %v2532_v13 = vld [vmem:[#allocation111_spill] sm:$0xff]  ;;  %v2534_v1 = vld [vmem:[#allocation106_spill] sm:$0xff] }
 0x19f   : > { %795 = vmatpush.msra.mxu3 %v2523_v14  ;;  %756 = vmatmul.f32.vlgmr.msra.gmra.mxu1 %v1678_v2  ;;  %v2533_v14 = vld [vmem:[#allocation113_spill] sm:$0xff] }
 0x1a0   : > { %898 = vmatpush.msrb.mxu0 %v2524_v7  ;;  %918 = vmatpush.msrb.mxu1 %v2525_v8  ;;  %v2535_v7 = vld [vmem:[#allocation107_spill] sm:$0xff]  ;;  %v2536_v8 = vld [vmem:[#allocation109_spill] sm:$0xff] }
 0x1a1   : > { %958 = vmatpush.msrb.mxu3 %v2526_v10  ;;  %775 = vmatpush.msra.mxu2 %v2531_v12  ;;  %v2537_v10 = vld [vmem:[#allocation102_spill] sm:$0xff] }
 0x1a2   : > { %899 = vmatpush.msrb.mxu0 %v2527_v11  ;;  %919 = vmatpush.msrb.mxu1 %v2528_v3  ;;  %v2538_v11 = vld [vmem:[#allocation120_spill] sm:$0xff]  ;;  %v2539_v3 = vld [vmem:[#allocation103_spill] sm:$0xff]  ;;  %v2542_v12 = vld [vmem:[#allocation98_spill] sm:$0xff] }
 0x1a3   : > { %959 = vmatpush.msrb.mxu3 %v2529_v4  ;;  %938 = vmatpush.msrb.mxu2 %v2538_v11  ;;  %v2540_v4 = vld [vmem:[#allocation105_spill] sm:$0xff]  ;;  %v2549_v11 = vld [vmem:[#allocation108_spill] sm:$0xff] }
 0x1a4   : > { %900 = vmatpush.msrb.mxu0 %v2530_v6  ;;  %920 = vmatpush.msrb.mxu1 %v2532_v13  ;;  %v2541_v6 = vld [vmem:[#allocation116_spill] sm:$0xff]  ;;  %v2543_v13 = vld [vmem:[#allocation99_spill] sm:$0xff] }
 0x1a5   : > { %960 = vmatpush.msrb.mxu3 %v2533_v14  ;;  %736 = vmatmul.f32.vlgmr.msra.gmra.mxu0 %v1678_v2  ;;  %v2544_v14 = vld [vmem:[#allocation101_spill] sm:$0xff] }
 0x1a6   : > { %901 = vmatpush.msrb.mxu0 %v2534_v1  ;;  %796 = vmatmul.f32.vlgmr.msra.gmra.mxu3 %v1678_v2  ;;  %v2545_v1 = vld [vmem:[#allocation112_spill] sm:$0xff] }
 0x1a7   : > { %921 = vmatpush.msrb.mxu1 %v2535_v7  ;;  %961 = vmatpush.msrb.mxu3 %v2536_v8  ;;  %v2546_v7 = vld [vmem:[#allocation94_spill] sm:$0xff]  ;;  %v2547_v8 = vld [vmem:[#allocation95_spill] sm:$0xff] }
 0x1a8   : > { %902 = vmatpush.msrb.mxu0 %v2537_v10  ;;  %939 = vmatpush.msrb.mxu2 %v2541_v6  ;;  %v2548_v10 = vld [vmem:[#allocation97_spill] sm:$0xff] }
 0x1a9   : > { %922 = vmatpush.msrb.mxu1 %v2539_v3  ;;  %962 = vmatpush.msrb.mxu3 %v2540_v4  ;;  %v2550_v3 = vld [vmem:[#allocation90_spill] sm:$0xff]  ;;  %v2551_v4 = vld [vmem:[#allocation91_spill] sm:$0xff]  ;;  %v2552_v6 = vld [vmem:[#allocation93_spill] sm:$0xff] }
 0x1aa   : > { %903 = vmatpush.msrb.mxu0 %v2542_v12  ;;  %940 = vmatpush.msrb.mxu2 %v2545_v1  ;;  %v2553_v12 = vld [vmem:[#allocation104_spill] sm:$0xff]  ;;  %v2556_v1 = vld [vmem:[#allocation89_spill] sm:$0xff] }
 0x1ab   : > { %923 = vmatpush.msrb.mxu1 %v2543_v13  ;;  %963 = vmatpush.msrb.mxu3 %v2544_v14  ;;  %v2554_v13 = vld [vmem:[#allocation86_spill] sm:$0xff]  ;;  %v2555_v14 = vld [vmem:[#allocation87_spill] sm:$0xff] }
 0x1ac   : > { %904 = vmatpush.msrb.mxu0 %v2546_v7  ;;  %941 = vmatpush.msrb.mxu2 %v2549_v11  ;;  %v2557_v7 = vld [vmem:[#allocation82_spill] sm:$0xff]  ;;  %v2560_v11 = vld [vmem:[#allocation100_spill] sm:$0xff] }
 0x1ad   : > { %924 = vmatpush.msrb.mxu1 %v2547_v8  ;;  %964 = vmatpush.msrb.mxu3 %v2548_v10  ;;  %v2558_v8 = vld [vmem:[#allocation83_spill] sm:$0xff]  ;;  %v2559_v10 = vld [vmem:[#allocation85_spill] sm:$0xff] }
 0x1ae   : > { %905 = vmatpush.msrb.mxu0 %v2550_v3  ;;  %942 = vmatpush.msrb.mxu2 %v2553_v12  ;;  %v2561_v3 = vld [vmem:[#allocation78_spill] sm:$0xff]  ;;  %v2564_v12 = vld [vmem:[#allocation96_spill] sm:$0xff] }
 0x1af   : > { %925 = vmatpush.msrb.mxu1 %v2551_v4  ;;  %965 = vmatpush.msrb.mxu3 %v2552_v6  ;;  %v2562_v4 = vld [vmem:[#allocation79_spill] sm:$0xff]  ;;  %v2563_v6 = vld [vmem:[#allocation81_spill] sm:$0xff] }
 0x1b0   : > { %906 = vmatpush.msrb.mxu0 %v2554_v13  ;;  %776 = vmatmul.f32.vlgmr.msra.gmra.mxu2 %v1678_v2  ;;  %v2565_v13 = vld [vmem:[#allocation74_spill] sm:$0xff]  ;;  %v2566_v2 = vld [vmem:[#allocation75_spill] sm:$0xff] }
 0x1b1   : > { %926 = vmatpush.msrb.mxu1 %v2555_v14  ;;  %966 = vmatpush.msrb.mxu3 %v2556_v1  ;;  %v2567_v14 = vld [vmem:[#allocation77_spill] sm:$0xff]  ;;  %v2568_v1 = vld [vmem:[#allocation92_spill] sm:$0xff] }
 0x1b2   : > { %907 = vmatpush.msrb.mxu0 %v2557_v7  ;;  %943 = vmatpush.msrb.mxu2 %v2560_v11  ;;  %v2569_v7 = vld [vmem:[#allocation70_spill] sm:$0xff]  ;;  %v2572_v11 = vld [vmem:[#allocation88_spill] sm:$0xff] }
 0x1b3   : > { %927 = vmatpush.msrb.mxu1 %v2558_v8  ;;  %967 = vmatpush.msrb.mxu3 %v2559_v10  ;;  %v2570_v8 = vld [vmem:[#allocation71_spill] sm:$0xff]  ;;  %v2571_v10 = vld [vmem:[#allocation73_spill] sm:$0xff] }
 0x1b4   : > { %908 = vmatpush.msrb.mxu0 %v2561_v3  ;;  %944 = vmatpush.msrb.mxu2 %v2564_v12  ;;  %v880_v3 = vstv %s1682_s1  ;;  %v2575_v12 = vld [vmem:[#allocation69_spill] sm:$0xff]  ;;  %s707_s1 = sadd.s32 1, %s1682_s1  }
 0x1b5   : > { %928 = vmatpush.msrb.mxu1 %v2562_v4  ;;  %968 = vmatpush.msrb.mxu3 %v2563_v6  ;;  %v2573_v4 = vld [vmem:[#allocation66_spill] sm:$0xff]  ;;  %v2574_v6 = vld [vmem:[#allocation67_spill] sm:$0xff]  ;;  %p704_p0 = scmp.ge.s32.totalorder %s707_s1, 8  }
 0x1b6   : > { %909 = vmatpush.msrb.mxu0 %v2565_v13  ;;  %945 = vmatpush.msrb.mxu2 %v2568_v1  ;;  %v2576_v13 = vld [vmem:[#allocation84_spill] sm:$0xff]  ;;  %v1113_v35 = vld [vmem:[#allocation15 + $0x50] sm:$0xff] (%p704_p0)  ;;  %v1111_v39 = vld [vmem:[#allocation15 + $0x40] sm:$0xff] (%p704_p0)  ;;  %s1227_s20 = sshll.u32 (%p704_p0), %s2382_s10, 4  ;;  %s1228_s20 = int_to_ptr.hbm [resolvable:$true] %s1227_s20 }
 0x1b7   : > { %929 = vmatpush.msrb.mxu1 %v2566_v2  ;;  %969 = vmatpush.msrb.mxu3 %v2567_v14  ;;  %v2577_v2 = vld [vmem:[#allocation62_spill] sm:$0xff]  ;;  %v2578_v14 = vld [vmem:[#allocation63_spill] sm:$0xff]  ;;  %v2579_v1 = vld [vmem:[#allocation124_spill] sm:$0xff] }
 0x1b8   : > { %910 = vmatpush.msrb.mxu0 %v2569_v7  ;;  %946 = vmatpush.msrb.mxu2 %v2572_v11  ;;  %vm881_vm1 = vcmp.lt.s32.totalorder %v880_v3, %v2579_v1  ;;  %v2580_v7 = vld [vmem:[#allocation65_spill] sm:$0xff]  ;;  %v2583_v11 = vld [vmem:[#allocation59_spill] sm:$0xff]  ;;  %v2585_v3 = vld [vmem:[#allocation76_spill] sm:$0xff] }
 0x1b9   : > { %930 = vmatpush.msrb.mxu1 %v2570_v8  ;;  %970 = vmatpush.msrb.mxu3 %v2571_v10  ;;  %v2581_v8 = vld [vmem:[#allocation80_spill] sm:$0xff]  ;;  %v2582_v10 = vld [vmem:[#allocation58_spill] sm:$0xff]  ;;  %v1097_v36 = vld [vmem:[#allocation14 + $0x50] sm:$0xff] (%p704_p0) }
 0x1ba   : > { %911 = vmatpush.msrb.mxu0 %v2573_v4  ;;  %947 = vmatpush.msrb.mxu2 %v2576_v13  ;;  %v2584_v4 = vld [vmem:[#allocation61_spill] sm:$0xff]  ;;  %v1058_v13 = vstv %s2279_s4  ;;  %v1112_v37 = vld [vmem:[#allocation15 + $0x48] sm:$0xff] (%p704_p0)  ;;  %v1095_v40 = vld [vmem:[#allocation14 + $0x40] sm:$0xff] (%p704_p0) }
 0x1bb   : > { %931 = vmatpush.msrb.mxu1 %v2574_v6  ;;  %971 = vmatpush.msrb.mxu3 %v2575_v12  ;;  %v1696_v6 = vmov 0   ;;  %vm1059_vm2 = vcmp.lt.s32.totalorder %v1058_v13, %v2579_v1  ;;  %v716_v13 = vld [vmem:[%s715_s28] sm:$0xff]  ;;  %v1096_v38 = vld [vmem:[#allocation14 + $0x48] sm:$0xff] (%p704_p0)  ;;  %v1110_v41 = vld [vmem:[#allocation15 + $0x38] sm:$0xff] (%p704_p0) }
 0x1bc   : > { %912 = vmatpush.msrb.mxu0 %v2577_v2  ;;  %948 = vmatpush.msrb.mxu2 %v2581_v8  ;;  %v882_v12 = vsel %vm881_vm1, 1, %v1696_v6  ;;  %v2586_v2 = vld [vmem:[#allocation72_spill] sm:$0xff]  ;;  %v1060_v8 = vsel %vm1059_vm2, 1, %v1696_v6  ;;  %v1094_v42 = vld [vmem:[#allocation14 + $0x38] sm:$0xff] (%p704_p0)  ;;  %v1109_v43 = vld [vmem:[#allocation15 + $0x30] sm:$0xff] (%p704_p0) }
 0x1bd   : > { %932 = vmatpush.msrb.mxu1 %v2578_v14  ;;  %972 = vmatpush.msrb.mxu3 %v2580_v7  ;;  %v2587_v14 = vld [vmem:[#allocation68_spill] sm:$0xff]  ;;  %v1093_v44 = vld [vmem:[#allocation14 + $0x30] sm:$0xff] (%p704_p0)  ;;  %v1107_v47 = vld [vmem:[#allocation15 + $0x20] sm:$0xff] (%p704_p0) }
 0x1be   : > { %913 = vmatpush.msrb.mxu0 %v2582_v10  ;;  %949 = vmatpush.msrb.mxu2 %v2585_v3  ;;  %v2588_v7 = vld [vmem:[#allocation64_spill] sm:$0xff]  ;;  %v1091_v48 = vld [vmem:[#allocation14 + $0x20] sm:$0xff] (%p704_p0)  ;;  %v1106_v49 = vld [vmem:[#allocation15 + $0x18] sm:$0xff] (%p704_p0) }
 0x1bf   : > { %933 = vmatpush.msrb.mxu1 %v2583_v11  ;;  %973 = vmatpush.msrb.mxu3 %v2584_v4  ;;  %v2589_v10 = vld [vmem:[#allocation60_spill] sm:$0xff]  ;;  %v2590_v4 = vld [vmem:[#allocation122_spill] sm:$0xff]  ;;  %v1105_v51 = vld [vmem:[#allocation15 + $0x10] sm:$0xff] (%p704_p0) }
 0x1c0   : > { %914 = vmatmul.f32.vlgmr.msrb.gmra.mxu0 %v1670_v5  ;;  %934 = vmatmul.f32.vlgmr.msrb.gmra.mxu1 %v1670_v5  ;;  %v717_v11 = vld [vmem:[%s715_s28 + $0x8] sm:$0xff]  ;;  %v806_v3 = vperm.slane %v2590_v4, 1  ;;  %v1090_v50 = vld [vmem:[#allocation14 + $0x18] sm:$0xff] (%p704_p0)  ;;  %v1089_v52 = vld [vmem:[#allocation14 + $0x10] sm:$0xff] (%p704_p0) }
 0x1c1   : > { %974 = vmatmul.f32.vlgmr.msrb.gmra.mxu3 %v1670_v5  ;;  %1432 = vset.pattern.permute.xlu0 %v1696_v6  ;;  %v719_v6 = vld [vmem:[%s715_s28 + $0x18] sm:$0xff]  ;;  %v1108_v45 = vld [vmem:[#allocation15 + $0x28] sm:$0xff] (%p704_p0)  ;;  %v1103_v55 = vld [vmem:[#allocation15] sm:$0xff] (%p704_p0) }
 0x1c2   : > { %884 = vperm.xlu0 %1432, %v882_v12   ;;  %950 = vmatpush.msrb.mxu2 %v2586_v2  ;;  %v1092_v46 = vld [vmem:[#allocation14 + $0x28] sm:$0xff] (%p704_p0)  ;;  %v1087_v56 = vld [vmem:[#allocation14] sm:$0xff] (%p704_p0) }
 0x1c3   :  { %v1104_v53 = vld [vmem:[#allocation15 + $0x8] sm:$0xff] (%p704_p0) }
 0x1c4   : > { %951 = vmatpush.msrb.mxu2 %v2587_v14  ;;  %v805_v14 = vperm.slane %v2590_v4, 0  ;;  %v1088_v54 = vld [vmem:[#allocation14 + $0x8] sm:$0xff] (%p704_p0) }
 0x1c6   : > { %952 = vmatpush.msrb.mxu2 %v2588_v7 }
 0x1c8   : > { %953 = vmatpush.msrb.mxu2 %v2589_v10  ;;  %v808_v10 = vperm.slane %v2590_v4, 3 }
 0x1c9   : > { %954 = vmatmul.f32.vlgmr.msrb.gmra.mxu2 %v1670_v5 }
 0x1ca   : > { %1062 = vperm.xlu0 %1432, %v1060_v8  }
 0x21c   : > { %v757_v12 = vpop.f32.mrf.mxu1 }
 0x21d   : > { %v801_v15 = vadd.f32 %v757_v12, %v717_v11 }
 0x21f   : > { %v814_v2 = vadd.f32 %v806_v3, %v801_v15  ;;  %v718_v3 = vld [vmem:[%s715_s28 + $0x10] sm:$0xff] }
 0x221   : > { %v1335_v16 = vmul.f32 -1.442695, %v814_v2 }
 0x222   : > { %v737_v7 = vpop.f32.mrf.mxu0 }
 0x223   : > { %1433 = vpow2.f32 %v1335_v16  ;;  %v800_v1 = vadd.f32 %v737_v7, %v716_v13 }
 0x225   : > { %v813_v8 = vadd.f32 %v805_v14, %v800_v1  ;;  %v807_v1 = vperm.slane %v2590_v4, 2 }
 0x227   : > { %v1334_v20 = vmul.f32 -1.442695, %v813_v8 }
 0x229   : > { %v797_v17 = vpop.f32.mrf.mxu3  ;;  %v1434_v19 = vpop.eup %1433  ;;  %1435 = vpow2.f32 %v1334_v20 }
 0x22a   : > { %v803_v18 = vadd.f32 %v797_v17, %v719_v6  ;;  %v839_v22 = vadd.f32 1.0, %v1434_v19  ;;  %v894_v6 = vld [vmem:[%s2302_s30] sm:$0xff] }
 0x22c   : > { %v816_v21 = vadd.f32 %v808_v10, %v803_v18  ;;  %1437 = vrcp.f32 %v839_v22  ;;  %v851_v19 = vand.u32 2147483648, %v839_v22  ;;  %v849_v20 = vand.u32 2147483647, %v839_v22  ;;  %v2591_v10 = vld [vmem:[#allocation123_spill] sm:$0xff] }
 0x22d   : > { %vm845_vm3 = vweird.f32 %v839_v22  ;;  %v983_v8 = vperm.slane %v2591_v10, 0  ;;  %v986_v33 = vperm.slane %v2591_v10, 3 }
 0x22e   : > { %v1336_v15 = vmul.f32 -1.442695, %v816_v21  ;;  %vm2312_vm6 = vcmp.eq.f32.partialorder %v849_v20, 8.507059e+37 }
 0x22f   : > { %v1436_v11 = vpop.eup %1435 }
 0x230   : > { %1439 = vpow2.f32 %v1336_v15  ;;  %v820_v12 = vadd.f32 1.0, %v1436_v11  ;;  %v895_v15 = vld [vmem:[%s2302_s30 + $0x8] sm:$0xff] }
 0x232   : > { %v1438_v16 = vpop.eup %1437  ;;  %1441 = vrcp.f32 %v820_v12  ;;  %vm826_vm7 = vweird.f32 %v820_v12 }
 0x233   : > { %v777_v2 = vpop.f32.mrf.mxu2  ;;  %v841_v7 = vmul.f32 %v1438_v16, %v839_v22  ;;  %vm846_vm4 = vweird.f32 %v1438_v16 }
 0x234   : > { %v802_v17 = vadd.f32 %v777_v2, %v718_v3  ;;  %v852_v2 = vor.u32 1.1754944e-38, %v851_v19  ;;  %vm2308_vm5 = vmor %vm845_vm3, %vm846_vm4  ;;  %v832_v19 = vand.u32 2147483648, %v820_v12 }
 0x235   : > { %v842_v18 = vsub.f32 1.0, %v841_v7  ;;  %v984_v7 = vperm.slane %v2591_v10, 1 }
 0x236   : > { %v1440_v13 = vpop.eup %1439  ;;  %v815_v14 = vadd.f32 %v807_v1, %v802_v17  ;;  %v830_v1 = vand.u32 2147483647, %v820_v12 }
 0x237   : > { %v2298_v23 = vadd.f32 1.0, %v1440_v13  ;;  %v843_v21 = vmul.f32 %v1438_v16, %v842_v18 }
 0x238   : > { %v1442_v3 = vpop.eup %1441  ;;  %vm831_vm10 = vcmp.eq.f32.partialorder %v830_v1, 8.507059e+37 }
 0x239   : > { %1443 = vrcp.f32 %v2298_v23  ;;  %v844_v11 = vadd.f32 %v1438_v16, %v843_v21  ;;  %v822_v17 = vmul.f32 %v1442_v3, %v820_v12  ;;  %vm827_vm8 = vweird.f32 %v1442_v3 }
 0x23a   : > { %1445 = vtanh.f32 %v815_v14  ;;  %vm828_vm9 = vmor %vm826_vm7, %vm827_vm8  ;;  %vm865_vm11 = vweird.f32 %v2298_v23 }
 0x23b   : > { %v823_v26 = vsub.f32 1.0, %v822_v17  ;;  %v848_v28 = vsel %vm2308_vm5, %v1438_v16, %v844_v11  ;;  %v985_v17 = vperm.slane %v2591_v10, 2 }
 0x23d   : > { %v915_v13 = vpop.f32.mrf.mxu0  ;;  %v935_v24 = vpop.f32.mrf.mxu1  ;;  %v824_v30 = vmul.f32 %v1442_v3, %v823_v26 }
 0x23e   : > { %v978_v18 = vadd.f32 %v915_v13, %v894_v6  ;;  %v979_v25 = vadd.f32 %v935_v24, %v895_v15  ;;  %v833_v13 = vor.u32 1.1754944e-38, %v832_v19  ;;  %v853_v24 = vsel %vm2312_vm6, %v852_v2, %v848_v28  ;;  %v885_v19 = vpop.permute.xlu0 %884 }
 0x23f   : > { %v1444_v21 = vpop.eup %1443  ;;  %v825_v14 = vadd.f32 %v1442_v3, %v824_v30  ;;  %v871_v28 = vand.u32 2147483648, %v2298_v23  ;;  %vm886_vm15 = vcmp.eq.s32.totalorder %v885_v19, 1 }
 0x240   : > { %v991_v27 = vadd.f32 %v983_v8, %v978_v18  ;;  %v861_v20 = vmul.f32 %v1444_v21, %v2298_v23  ;;  %v992_v29 = vadd.f32 %v984_v7, %v979_v25  ;;  %v1446_v16 = vpop.eup %1445  ;;  %v875_v8 = vmul.f32 %v1674_v0, %v853_v24  ;;  %v896_v7 = vld [vmem:[%s2302_s30 + $0x10] sm:$0xff] }
 0x241   : > { %vm866_vm12 = vweird.f32 %v1444_v21  ;;  %v872_v22 = vor.u32 1.1754944e-38, %v871_v28 }
 0x242   : > { %v1340_v31 = vmul.f32 -1.442695, %v991_v27  ;;  %v862_v6 = vsub.f32 1.0, %v861_v20  ;;  %v1341_v34 = vmul.f32 -1.442695, %v992_v29  ;;  %v829_v27 = vsel %vm828_vm9, %v1442_v3, %v825_v14  ;;  %vm2328_vm13 = vmor %vm865_vm11, %vm866_vm12 }
 0x243   : > { %v834_v15 = vsel %vm831_vm10, %v833_v13, %v829_v27 }
 0x244   : > { %1447 = vpow2.f32 %v1340_v31  ;;  %v975_v4 = vpop.f32.mrf.mxu3  ;;  %v863_v26 = vmul.f32 %v1444_v21, %v862_v6  ;;  %v876_v29 = vmul.f32 %v1446_v16, %v834_v15  ;;  %v869_v31 = vand.u32 2147483647, %v2298_v23 }
 0x245   : > { %1449 = vpow2.f32 %v1341_v34  ;;  %v981_v25 = vadd.f32 %v975_v4, %v897_v32 }
 0x246   : > { %v864_v11 = vadd.f32 %v1444_v21, %v863_v26  ;;  %v2332_v0 = vadd.f32 %v876_v29, %v875_v8   ;;  %vm870_vm14 = vcmp.eq.f32.partialorder %v869_v31, 8.507059e+37 }
 0x247   : > { %v994_v12 = vadd.f32 %v986_v33, %v981_v25 }
 0x248   : > { %v868_v23 = vsel %vm2328_vm13, %v1444_v21, %v864_v11 }
 0x249   : > { %v1342_v30 = vmul.f32 -1.442695, %v994_v12  ;;  %v873_v20 = vsel %vm870_vm14, %v872_v22, %v868_v23 }
 0x24a   : > { %v1448_v2 = vpop.eup %1447 }
 0x24b   : > { %v1450_v34 = vpop.eup %1449  ;;  %v998_v33 = vadd.f32 1.0, %v1448_v2  ;;  %1451 = vpow2.f32 %v1342_v30 }
 0x24c   : > { %v1017_v3 = vadd.f32 1.0, %v1450_v34  ;;  %1453 = vtanh.f32 %v2332_v0  ;;  %v955_v1 = vpop.f32.mrf.mxu2 }
 0x24d   : > { %1455 = vrcp.f32 %v998_v33  ;;  %v980_v18 = vadd.f32 %v955_v1, %v896_v7  ;;  %v1010_v8 = vand.u32 2147483648, %v998_v33  ;;  %v1008_v29 = vand.u32 2147483647, %v998_v33 }
 0x24e   : > { %1457 = vrcp.f32 %v1017_v3  ;;  %v1029_v28 = vand.u32 2147483648, %v1017_v3  ;;  %v1027_v11 = vand.u32 2147483647, %v1017_v3  ;;  %vm1004_vm2 = vweird.f32 %v998_v33 }
 0x24f   : > { %v993_v13 = vadd.f32 %v985_v17, %v980_v18  ;;  %v1011_v7 = vor.u32 1.1754944e-38, %v1010_v8  ;;  %vm1023_vm4 = vweird.f32 %v1017_v3  ;;  %vm1009_vm5 = vcmp.eq.f32.partialorder %v1008_v29, 8.507059e+37  ;;  %v1063_v18 = vpop.permute.xlu0 %1062 }
 0x250   : > { %v1030_v1 = vor.u32 1.1754944e-38, %v1029_v28  ;;  %vm1028_vm7 = vcmp.eq.f32.partialorder %v1027_v11, 8.507059e+37  ;;  %vm1064_vm8 = vcmp.eq.s32.totalorder %v1063_v18, 1  ;;  %v1102_v28 = vld [vmem:[#allocation14 + $0x78] sm:$0xff] (%p704_p0)  ;;  %v1101_v11 = vld [vmem:[#allocation14 + $0x70] sm:$0xff] (%p704_p0) }
 0x251   : > { %v1452_v6 = vpop.eup %1451  ;;  %1362 = vmatpush.msra.mxu3 (%p704_p0), %v1102_v28  ;;  %1160 = vmatpush.msra.mxu1 (%p704_p0), %v1102_v28 }
 0x252   : > { %v1454_v24 = vpop.eup %1453  ;;  %v1037_v14 = vadd.f32 1.0, %v1452_v6 }
 0x253   : > { %v1456_v4 = vpop.eup %1455  ;;  %v2340_v2 = vmul.f32 %v1454_v24, %v873_v20   ;;  %1363 = vmatpush.msra.mxu3 (%p704_p0), %v1101_v11  ;;  %1161 = vmatpush.msra.mxu1 (%p704_p0), %v1101_v11 }
 0x254   : > { %v1458_v16 = vpop.eup %1457  ;;  %v1000_v25 = vmul.f32 %v1456_v4, %v998_v33  ;;  %1459 = vrcp.f32 %v1037_v14  ;;  %vm1005_vm0 = vweird.f32 %v1456_v4  ;;  %vm1043_vm10 = vweird.f32 %v1037_v14 }
 0x255   : > { %1461 = vtanh.f32 %v993_v13  ;;  %v887_v21 = vsel %vm886_vm15, %v2340_v2, 0.0  ;;  %v1019_v26 = vmul.f32 %v1458_v16, %v1017_v3  ;;  %vm1024_vm1 = vweird.f32 %v1458_v16  ;;  %vm1006_vm3 = vmor %vm1004_vm2, %vm1005_vm0  ;;  %v1114_v2 = vld [vmem:[#allocation15 + $0x58] sm:$0xff] (%p704_p0) }
 0x256   : > { %v1001_v27 = vsub.f32 1.0, %v1000_v25  ;;  %890 = vst [vmem:[%s889_s12] sm:$0xff] %v887_v21  ;;  %vm1025_vm6 = vmor %vm1023_vm4, %vm1024_vm1  ;;  %v1049_v3 = vand.u32 2147483648, %v1037_v14 }
 0x257   : > { %v1020_v15 = vsub.f32 1.0, %v1019_v26 }
 0x258   : > { %v1002_v12 = vmul.f32 %v1456_v4, %v1001_v27  ;;  %v1050_v27 = vor.u32 1.1754944e-38, %v1049_v3 }
 0x259   : > { %v1021_v30 = vmul.f32 %v1458_v16, %v1020_v15 }
 0x25a   : > { %v1460_v31 = vpop.eup %1459  ;;  %v1003_v32 = vadd.f32 %v1456_v4, %v1002_v12 }
 0x25b   : > { %v1462_v34 = vpop.eup %1461  ;;  %v1022_v22 = vadd.f32 %v1458_v16, %v1021_v30  ;;  %v1039_v17 = vmul.f32 %v1460_v31, %v1037_v14  ;;  %vm1044_vm9 = vweird.f32 %v1460_v31  ;;  %v1117_v30 = vld [vmem:[#allocation15 + $0x70] sm:$0xff] (%p704_p0) }
 0x25c   : > { %v1007_v23 = vsel %vm1006_vm3, %v1456_v4, %v1003_v32  ;;  %v1047_v4 = vand.u32 2147483647, %v1037_v14  ;;  %vm1045_vm11 = vmor %vm1043_vm10, %vm1044_vm9  ;;  %v1118_v14 = vld [vmem:[#allocation15 + $0x78] sm:$0xff] (%p704_p0)  ;;  %v1100_v32 = vld [vmem:[#allocation14 + $0x68] sm:$0xff] (%p704_p0) }
 0x25d   : > { %v1012_v19 = vsel %vm1009_vm5, %v1011_v7, %v1007_v23  ;;  %v1026_v20 = vsel %vm1025_vm6, %v1458_v16, %v1022_v22  ;;  %v1040_v6 = vsub.f32 1.0, %v1039_v17  ;;  %1346 = vmatpush.msra.mxu2 (%p704_p0), %v1118_v14  ;;  %1119 = vmatpush.msra.mxu0 (%p704_p0), %v1118_v14  ;;  %v1099_v7 = vld [vmem:[#allocation14 + $0x60] sm:$0xff] (%p704_p0)  ;;  %v1098_v22 = vld [vmem:[#allocation14 + $0x58] sm:$0xff] (%p704_p0)  ;;  %v1076_v62 = vld [vmem:[#allocation4 + $0x28] sm:$0xff] (%p704_p0) }
 0x25e   : > { %v1031_v13 = vsel %vm1028_vm7, %v1030_v1, %v1026_v20  ;;  %v1054_v24 = vmul.f32 %v1462_v34, %v1012_v19  ;;  %vm1048_vm12 = vcmp.eq.f32.partialorder %v1047_v4, 8.507059e+37  ;;  %v1115_v34 = vld [vmem:[#allocation15 + $0x60] sm:$0xff] (%p704_p0)  ;;  %1364 = vmatpush.msra.mxu3 (%p704_p0), %v1100_v32  ;;  %1162 = vmatpush.msra.mxu1 (%p704_p0), %v1100_v32  ;;  %v1077_v0 = vld [vmem:[#allocation4 + $0x30] sm:$0xff] (%p704_p0)  ;;  %v1078_v1 = vld [vmem:[#allocation4 + $0x38] sm:$0xff] (%p704_p0) }
 0x25f   : > { %v1041_v25 = vmul.f32 %v1460_v31, %v1040_v6  ;;  %v1053_v33 = vmul.f32 %v1666_v9, %v1031_v13  ;;  %1347 = vmatpush.msra.mxu2 (%p704_p0), %v1117_v30  ;;  %1120 = vmatpush.msra.mxu0 (%p704_p0), %v1117_v30  ;;  %v1075_v58 = vld [vmem:[#allocation4 + $0x20] sm:$0xff] (%p704_p0)  ;;  %v1073_v17 = vld [vmem:[#allocation4 + $0x10] sm:$0xff] (%p704_p0)  ;;  %v1074_v19 = vld [vmem:[#allocation4 + $0x18] sm:$0xff] (%p704_p0) }
 0x260   :  { %1365 = vmatpush.msra.mxu3 (%p704_p0), %v1099_v7  ;;  %1163 = vmatpush.msra.mxu1 (%p704_p0), %v1099_v7  ;;  %v1071_v60 = vld [vmem:[#allocation4] sm:$0xff] (%p704_p0) }
 0x261   : > { %v1055_v21 = vadd.f32 %v1054_v24, %v1053_v33  ;;  %v1042_v26 = vadd.f32 %v1460_v31, %v1041_v25  ;;  %v1465_v20 = vld [vmem:[%s2381_s9] ss:$0 sm:$0xff] (%p704_p0)  ;;  %s1697_s9 = smov (%p704_p0), [#allocation17]  }
 0x262   :  { %1366 = vmatpush.msra.mxu3 (%p704_p0), %v1098_v22  ;;  %1164 = vmatpush.msra.mxu1 (%p704_p0), %v1098_v22  ;;  %s1225_s17 = sshll.u32 (%p704_p0), %s1697_s9, 4  ;;  %s1226_s17 = int_to_ptr.vmem [resolvable:$true] %s1225_s17 }
 0x263   : > { %1463 = vtanh.f32 %v1055_v21  ;;  %v1070_v9 = vsel %vm1064_vm8, %v1055_v21, %v1666_v9   ;;  %v1046_v16 = vsel %vm1045_vm11, %v1460_v31, %v1042_v26  ;;  %v1116_v31 = vld [vmem:[#allocation15 + $0x68] sm:$0xff] (%p704_p0) }
 0x264   : > { %v1051_v15 = vsel %vm1048_vm12, %v1050_v27, %v1046_v16  ;;  %1348 = vmatpush.msra.mxu2 (%p704_p0), %v1116_v31  ;;  %1121 = vmatpush.msra.mxu0 (%p704_p0), %v1116_v31  ;;  %v1072_v9 = vld [vmem:[#allocation4 + $0x8] sm:$0xff] (%p704_p0) }
 0x265   :  { %1367 = vmatpush.msra.mxu3 (%p704_p0), %v1097_v36  ;;  %1165 = vmatpush.msra.mxu1 (%p704_p0), %v1097_v36 }
 0x266   :  { %1349 = vmatpush.msra.mxu2 (%p704_p0), %v1115_v34  ;;  %1122 = vmatpush.msra.mxu0 (%p704_p0), %v1115_v34 }
 0x267   :  { %1368 = vmatpush.msra.mxu3 (%p704_p0), %v1096_v38  ;;  %1166 = vmatpush.msra.mxu1 (%p704_p0), %v1096_v38 }
 0x268   :  { %1350 = vmatpush.msra.mxu2 (%p704_p0), %v1114_v2  ;;  %1123 = vmatpush.msra.mxu0 (%p704_p0), %v1114_v2 }
 0x269   : > { %v1464_v8 = vpop.eup %1463  ;;  %706 = sbr.rel (!%p704_p0) target bundleno = 384 (0x180), region = 95  ;;  %1369 = vmatpush.msra.mxu3 (%p704_p0), %v1095_v40  ;;  %1167 = vmatpush.msra.mxu1 (%p704_p0), %v1095_v40 }
 0x26a   : > { %v1057_v12 = vmul.f32 %v1464_v8, %v1051_v15  ;;  %1351 = vmatpush.msra.mxu2 (%p704_p0), %v1113_v35  ;;  %1124 = vmatpush.msra.mxu0 (%p704_p0), %v1113_v35 }
 0x26b   :  { %1370 = vmatpush.msra.mxu3 (%p704_p0), %v1094_v42  ;;  %1168 = vmatpush.msra.mxu1 (%p704_p0), %v1094_v42 }
 0x26c   : > { %v1065_v29 = vsel %vm1064_vm8, %v1057_v12, 0.0  ;;  %v1069_v5 = vsel %vm1064_vm8, %v1057_v12, %v1670_v5   ;;  %1352 = vmatpush.msra.mxu2 (%p704_p0), %v1112_v37  ;;  %1125 = vmatpush.msra.mxu0 (%p704_p0), %v1112_v37 }
 0x26d   : > { %1068 = vst [vmem:[%s1067_s0] sm:$0xff] %v1065_v29  ;;  %1371 = vmatpush.msra.mxu3 (%p704_p0), %v1093_v44  ;;  %1169 = vmatpush.msra.mxu1 (%p704_p0), %v1093_v44 }
 0x26e   :  { %1353 = vmatpush.msra.mxu2 %v1111_v39  ;;  %1126 = vmatpush.msra.mxu0 %v1111_v39 }
 0x26f   :  { %1372 = vmatpush.msra.mxu3 %v1092_v46  ;;  %1170 = vmatpush.msra.mxu1 %v1092_v46 }
 0x270   :  { %1354 = vmatpush.msra.mxu2 %v1110_v41  ;;  %1127 = vmatpush.msra.mxu0 %v1110_v41 }
 0x271   :  { %1373 = vmatpush.msra.mxu3 %v1091_v48  ;;  %1171 = vmatpush.msra.mxu1 %v1091_v48 }
 0x272   :  { %1355 = vmatpush.msra.mxu2 %v1109_v43  ;;  %1128 = vmatpush.msra.mxu0 %v1109_v43 }
 0x273   :  { %1374 = vmatpush.msra.mxu3 %v1090_v50  ;;  %1172 = vmatpush.msra.mxu1 %v1090_v50 }
 0x274   :  { %1356 = vmatpush.msra.mxu2 %v1108_v45  ;;  %1129 = vmatpush.msra.mxu0 %v1108_v45  ;;  %v1083_v57 = vld [vmem:[#allocation5 + $0x20] sm:$0xff]  ;;  %v1084_v61 = vld [vmem:[#allocation5 + $0x28] sm:$0xff]  ;;  %v1085_v5 = vld [vmem:[#allocation5 + $0x30] sm:$0xff] }
 0x275   :  { %1375 = vmatpush.msra.mxu3 %v1089_v52  ;;  %1173 = vmatpush.msra.mxu1 %v1089_v52  ;;  %v1079_v59 = vld [vmem:[#allocation5] sm:$0xff]  ;;  %v1080_v63 = vld [vmem:[#allocation5 + $0x8] sm:$0xff]  ;;  %v1081_v10 = vld [vmem:[#allocation5 + $0x10] sm:$0xff] }
 0x276   :  { %1357 = vmatpush.msra.mxu2 %v1107_v47  ;;  %1130 = vmatpush.msra.mxu0 %v1107_v47  ;;  %v1086_v23 = vld [vmem:[#allocation5 + $0x38] sm:$0xff] }
 0x277   :  { %1376 = vmatpush.msra.mxu3 %v1088_v54  ;;  %1174 = vmatpush.msra.mxu1 %v1088_v54  ;;  %v1082_v18 = vld [vmem:[#allocation5 + $0x18] sm:$0xff] }
 0x278   :  { %1358 = vmatpush.msra.mxu2 %v1106_v49  ;;  %1131 = vmatpush.msra.mxu0 %v1106_v49 }
 0x279   :  { %1377 = vmatpush.msra.mxu3 %v1087_v56  ;;  %1175 = vmatpush.msra.mxu1 %v1087_v56 }
 0x27a   :  { %1359 = vmatpush.msra.mxu2 %v1105_v51  ;;  %1132 = vmatpush.msra.mxu0 %v1105_v51 }
 0x27b   :  { %1188 = vmatmul.f32.vlgmr.msra.gmra.mxu3 %v1075_v58  ;;  %1176 = vmatmul.f32.vlgmr.msra.gmra.mxu1 %v1071_v60 }
 0x27c   :  { %1360 = vmatpush.msra.mxu2 %v1104_v53  ;;  %1133 = vmatpush.msra.mxu0 %v1104_v53 }
 0x27e   :  { %1361 = vmatpush.msra.mxu2 %v1103_v55  ;;  %1134 = vmatpush.msra.mxu0 %v1103_v55 }
 0x27f   :  { %1147 = vmatmul.f32.vlgmr.msra.gmra.mxu2 %v1083_v57  ;;  %1135 = vmatmul.f32.vlgmr.msra.gmra.mxu0 %v1079_v59 }
 0x283   :  { %1191 = vmatmul.f32.gmra.mxu3 %v1076_v62  ;;  %1179 = vmatmul.f32.gmra.mxu1 %v1072_v9 }
 0x287   :  { %1150 = vmatmul.f32.gmra.mxu2 %v1084_v61  ;;  %1138 = vmatmul.f32.gmra.mxu0 %v1080_v63 }
 0x28b   :  { %1194 = vmatmul.f32.gmra.mxu3 %v1077_v0  ;;  %1182 = vmatmul.f32.gmra.mxu1 %v1073_v17 }
 0x28f   :  { %1153 = vmatmul.f32.gmra.mxu2 %v1085_v5  ;;  %1141 = vmatmul.f32.gmra.mxu0 %v1081_v10 }
 0x293   :  { %1197 = vmatmul.f32.gmra.mxu3 %v1078_v1  ;;  %1185 = vmatmul.f32.gmra.mxu1 %v1074_v19 }
 0x297   :  { %1156 = vmatmul.f32.gmra.mxu2 %v1086_v23  ;;  %1144 = vmatmul.f32.gmra.mxu0 %v1082_v18 }
 0x2f8   :  { %v1177_v13 = vpop.f32.mrf.mxu1 }
 0x2fc   :  { %v1136_v6 = vpop.f32.mrf.mxu0 }
 0x2fd   :  { %v1178_v24 = vadd.f32 %v1177_v13, %v1136_v6 }
 0x2fe   :  { %v1189_v21 = vpop.f32.mrf.mxu3 }
 0x2ff   :  { %v1205_v25 = vadd.f32 %v1465_v20, %v1178_v24 }
 0x300   :  { %v1180_v16 = vpop.f32.mrf.mxu1 }
 0x301   :  { %1213 = vst [vmem:[#allocation17] sm:$0xff] %v1205_v25 }
 0x302   :  { %v1148_v33 = vpop.f32.mrf.mxu2 }
 0x303   :  { %v1190_v26 = vadd.f32 %v1189_v21, %v1148_v33 }
 0x304   :  { %v1139_v4 = vpop.f32.mrf.mxu0 }
 0x305   :  { %v1209_v3 = vadd.f32 %v1465_v20, %v1190_v26  ;;  %v1181_v27 = vadd.f32 %v1180_v16, %v1139_v4 }
 0x306   :  { %v1192_v12 = vpop.f32.mrf.mxu3 }
 0x307   :  { %1217 = vst [vmem:[#allocation17 + $0x20] sm:$0xff] %v1209_v3  ;;  %v1206_v8 = vadd.f32 %v1465_v20, %v1181_v27 }
 0x308   :  { %v1183_v30 = vpop.f32.mrf.mxu1 }
 0x309   :  { %1214 = vst [vmem:[#allocation17 + $0x8] sm:$0xff] %v1206_v8 }
 0x30a   :  { %v1151_v15 = vpop.f32.mrf.mxu2 }
 0x30b   :  { %v1193_v29 = vadd.f32 %v1192_v12, %v1151_v15 }
 0x30c   :  { %v1142_v28 = vpop.f32.mrf.mxu0 }
 0x30d   :  { %v1210_v14 = vadd.f32 %v1465_v20, %v1193_v29  ;;  %v1184_v11 = vadd.f32 %v1183_v30, %v1142_v28 }
 0x30e   :  { %v1195_v34 = vpop.f32.mrf.mxu3 }
 0x30f   :  { %1218 = vst [vmem:[#allocation17 + $0x28] sm:$0xff] %v1210_v14  ;;  %v1207_v31 = vadd.f32 %v1465_v20, %v1184_v11 }
 0x310   :  { %v1186_v35 = vpop.f32.mrf.mxu1 }
 0x311   :  { %1215 = vst [vmem:[#allocation17 + $0x10] sm:$0xff] %v1207_v31 }
 0x312   :  { %v1154_v32 = vpop.f32.mrf.mxu2 }
 0x313   :  { %v1196_v7 = vadd.f32 %v1195_v34, %v1154_v32 }
 0x314   :  { %v1145_v22 = vpop.f32.mrf.mxu0 }
 0x315   :  { %v1211_v2 = vadd.f32 %v1465_v20, %v1196_v7  ;;  %v1187_v36 = vadd.f32 %v1186_v35, %v1145_v22 }
 0x316   :  { %v1198_v39 = vpop.f32.mrf.mxu3 }
 0x317   :  { %1219 = vst [vmem:[#allocation17 + $0x30] sm:$0xff] %v1211_v2  ;;  %v1208_v37 = vadd.f32 %v1465_v20, %v1187_v36 }
 0x319   :  { %1216 = vst [vmem:[#allocation17 + $0x18] sm:$0xff] %v1208_v37 }
 0x31a   :  { %v1157_v38 = vpop.f32.mrf.mxu2 }
 0x31b   :  { %v1199_v40 = vadd.f32 %v1198_v39, %v1157_v38 }
 0x31d   :  { %v1212_v41 = vadd.f32 %v1465_v20, %v1199_v40 }
 0x31f   :  { %1220 = vst [vmem:[#allocation17 + $0x38] sm:$0xff] %v1212_v41 }
 0x320   :  { %1233 = dma.vmem_to_hbm [thread:$0]  %s1226_s17, 1024, %s1228_s20, [#allocation8], %s1691_s5, %s1691_s5, %s1692_s14  }
 0x321   :  { %1662 = dma.done.wait [#allocation8], 1024  }
 0x322   :  { %1663 = vsyncadd [#allocation8], 4294966272 }
 0x323   :  { %1238 = vsyncpa [#allocation7], 1 }
 0x324   :  { %1239 = vsyncpa [#allocation10], 1 }
 0x325   :  { %1240 = vsyncpa [#allocation13], 1 }
 0x326   :  { %1241 = vsyncpa [#allocation16], 1 }
 0x327   :  { %1242 = vsyncpa [#allocation8], 1 }

</bundles_post_ra>
